<compile_context>
chip_gen: v7x
topology: tpu7x:2x2x1
jax: 0.10.0
libtpu: 0.0.40
codegen_flags: <defaults>
</compile_context>

<pallas_src>
import numpy as np

import jax
import jax.numpy as jnp
from jax import lax
from jax.experimental import pallas as pl
from jax.experimental.pallas import tpu as pltpu

EPS = 1e-5


def _round_up(v, m):
    return ((v + m - 1) // m) * m


def _build_conv_row_mats(w_fold, n_batch, wb, cin, cout, k_pad, nl_pad):
    """Per-kernel-row conv matrices: (3, k_pad, nl_pad).

    W[dy, n*(wb+2)*cin + u*cin + c, n*wb*cout + j*cout + o] = w_fold[dy, u-j, c, o]
    for 0 <= u - j <= 2, zero elsewhere (including the lane padding).
    """
    wp = wb + 2
    u = np.arange(wp)[:, None]
    j = np.arange(wb)[None, :]
    dx = u - j
    valid = jnp.asarray(((dx >= 0) & (dx <= 2)).astype(np.float32))
    dxc = np.clip(dx, 0, 2)
    eye_n = jnp.eye(n_batch, dtype=jnp.float32)
    mats = []
    for dy in range(3):
        g = w_fold[dy][dxc]                      # (wp, wb, cin, cout)
        g = g * valid[:, :, None, None]
        g = jnp.transpose(g, (0, 2, 1, 3))       # (wp, cin, wb, cout)
        single = g.reshape(wp * cin, wb * cout)
        blk = jnp.kron(eye_n, single)            # block-diag over samples
        full = jnp.zeros((k_pad, nl_pad), jnp.float32)
        full = full.at[:blk.shape[0], :blk.shape[1]].set(blk)
        mats.append(full)
    return jnp.stack(mats, axis=0)


def _build_pool_sel(n_batch, wb, cout, nl_pad, tgt_pad, pad_cols):
    """0/1 selection matrices for the column half of MaxPool2d(2,2).

    Maps act lanes (n*wb*cout + j*cout + o) either into the next block's
    padded layout (pad_cols=True: n*(wb/2+2)*cout + (j'+1)*cout + o) or into
    the flatten layout (pad_cols=False: n*(wb/2)*cout + j'*cout + o).
    sel_a picks even j, sel_b picks odd j.
    """
    wb2 = wb // 2
    sel_a = np.zeros((nl_pad, tgt_pad), np.float32)
    sel_b = np.zeros((nl_pad, tgt_pad), np.float32)
    per = (wb2 + 2) * cout if pad_cols else wb2 * cout
    off = cout if pad_cols else 0
    for n in range(n_batch):
        for jp in range(wb2):
            for o in range(cout):
                tgt = n * per + jp * cout + off + o
                sel_a[n * wb * cout + (2 * jp) * cout + o, tgt] = 1.0
                sel_b[n * wb * cout + (2 * jp + 1) * cout + o, tgt] = 1.0
    return jnp.asarray(sel_a), jnp.asarray(sel_b)


# ----------------------------- fused forward -----------------------------

def encoder_forward(x, params):
    f32 = jnp.float32
    x = x.astype(f32)
    N, C0, H, W = x.shape
    assert C0 == 1, "module spec: first conv always has 1 input channel"

    conv_ps = params["conv_blocks"]
    mlp_ps = params["mlp_layers"]
    lat_p = params["latent"]
    B = len(conv_ps)
    assert H % (2 ** B) == 0 and W % (2 ** B) == 0

    chans = [C0] + [int(p["w"].shape[-1]) for p in conv_ps]
    spatial = [(H // (2 ** b), W // (2 ** b)) for b in range(B + 1)]
    cfin, (hfin, wfin) = chans[-1], spatial[B]
    latent_size = int(lat_p["w"].shape[1])

    # Lane widths padded up to multiples of 128 -> every conv/pool tile is
    # lane-dense; padded lanes are kept at exactly zero on both operands.
    pad_lanes = [_round_up(N * (spatial[b][1] + 2) * chans[b], 128) for b in range(B)]
    act_lanes = [_round_up(N * spatial[b][1] * chans[b + 1], 128) for b in range(B)]

    def full_spec(shape):
        nd = len(shape)
        return pl.BlockSpec(tuple(shape), lambda i, _nd=nd: (0,) * _nd)

    args, in_specs = [x], [full_spec((N, C0, H, W))]

    # ------- conv blocks: fold BN offline, build per-dy MXU matrices -------
    for b, p in enumerate(conv_ps):
        cin, cout = chans[b], chans[b + 1]
        hb, wb = spatial[b]
        scale = p["gamma"] / jnp.sqrt(p["var"] + EPS)
        w_fold = (p["w"] * scale).astype(f32)                         # (3,3,cin,cout)
        shift = ((p["b"] - p["mean"]) * scale + p["beta"]).astype(f32)
        wdy = _build_conv_row_mats(w_fold, N, wb, cin, cout,
                                   pad_lanes[b], act_lanes[b])
        shift_row = jnp.zeros((1, act_lanes[b]), f32)
        shift_row = shift_row.at[0, :N * wb * cout].set(jnp.tile(shift, N * wb))
        tgt_pad = pad_lanes[b + 1] if b + 1 < B else N * wfin * cfin
        sel_a, sel_b = _build_pool_sel(N, wb, cout, act_lanes[b], tgt_pad,
                                       pad_cols=(b + 1 < B))
        args += [wdy, shift_row, sel_a, sel_b]
        in_specs += [full_spec(a.shape) for a in (wdy, shift_row, sel_a, sel_b)]

    # ------- MLP: fold BN, fold the NCHW flatten permutation into w1 -------
    mats = []
    p0 = mlp_ps[0]
    d1 = int(p0["w"].shape[1])
    s0 = p0["gamma"] / jnp.sqrt(p0["var"] + EPS)
    w1 = ((p0["w"] * s0).reshape(cfin, hfin, wfin, d1)
          .transpose(1, 2, 0, 3).reshape(hfin * wfin * cfin, d1)).astype(f32)
    b1 = ((p0["b"] - p0["mean"]) * s0 + p0["beta"]).astype(f32)[None, :]
    mats.append((w1, b1))
    for p in mlp_ps[1:]:
        s = p["gamma"] / jnp.sqrt(p["var"] + EPS)
        mats.append(((p["w"] * s).astype(f32),
                     ((p["b"] - p["mean"]) * s + p["beta"]).astype(f32)[None, :]))
    mats.append((lat_p["w"].astype(f32), lat_p["b"].astype(f32)[None, :]))
    for w, bb in mats:
        args += [w, bb]
        in_specs += [full_spec(w.shape), full_spec(bb.shape)]

    # ------------------------------ scratch -------------------------------
    scratch = []
    for b in range(B):
        hb, wb = spatial[b]
        scratch.append(pltpu.VMEM((hb + 2, pad_lanes[b]), f32))   # padded input
        scratch.append(pltpu.VMEM((hb, act_lanes[b]), f32))       # conv+BN+ReLU
    scratch.append(pltpu.VMEM((N, cfin * hfin * wfin), f32))      # flatten buf

    n_lin = len(mats)

    # ------------------------------- kernel -------------------------------
    def kernel(*refs):
        it = iter(refs)
        x_ref = next(it)
        conv_refs = [tuple(next(it) for _ in range(4)) for _ in range(B)]
        lin_refs = [(next(it), next(it)) for _ in range(n_lin)]
        o_ref = next(it)
        pads_acts = [(next(it), next(it)) for _ in range(B)]
        h0_ref = next(it)

        # Pack the NCHW input into the padded batch-in-lanes layout (Cin==1).
        pad0, _ = pads_acts[0]
        h0s, w0s = spatial[0]
        pad0[...] = jnp.zeros_like(pad0)
        for n in range(N):
            base = n * (w0s + 2) + 1
            pad0[1:h0s + 1, base:base + w0s] = x_ref[n, 0]

        for b in range(B):
            hb, wb = spatial[b]
            cout = chans[b + 1]
            wdy_ref, sh_ref, sel_a_ref, sel_b_ref = conv_refs[b]
            pad_ref, act_ref = pads_acts[b]

            # Conv3x3(pad=1) + folded BN + ReLU: one MXU matmul per kernel
            # row (acc += dot), bias/BN shift added once before the ReLU.
            acc = jnp.zeros((hb, act_ref.shape[1]), jnp.float32)
            for dy in range(3):
                acc = acc + jnp.dot(pad_ref[dy:dy + hb, :], wdy_ref[dy],
                                    preferred_element_type=jnp.float32)
            act_ref[...] = jnp.maximum(acc + sh_ref[...], 0.0)
            # TODO(synk): Dropout2d(p=0.2) / BatchNorm batch statistics are
            # eval-mode here (identity / running stats).

            # MaxPool2d(2,2): stride-2 sublane reads + VPU max over rows,
            # then one even/odd selection-matmul pair over columns that also
            # lays the result out for the next stage.
            r_even = act_ref[pl.ds(0, hb // 2, stride=2), :]
            r_odd = act_ref[pl.ds(1, hb // 2, stride=2), :]
            rm = jnp.maximum(r_even, r_odd)
            pooled = jnp.maximum(
                jnp.dot(rm, sel_a_ref[...], preferred_element_type=jnp.float32),
                jnp.dot(rm, sel_b_ref[...], preferred_element_type=jnp.float32))

            if b + 1 < B:
                nxt_pad, _ = pads_acts[b + 1]
                nxt_pad[...] = jnp.zeros_like(nxt_pad)
                nxt_pad[1:hb // 2 + 1, :] = pooled
            else:
                s_blk = wfin * cfin
                for i in range(hfin):
                    for n in range(N):
                        h0_ref[n:n + 1, i * s_blk:(i + 1) * s_blk] = (
                            pooled[i:i + 1, n * s_blk:(n + 1) * s_blk])

        # (Linear + BN + ReLU) x L, then latent Linear + ReLU, batched (M=N).
        h = h0_ref[...]
        for w_ref, b_ref in lin_refs:
            h = jnp.maximum(
                jnp.dot(h, w_ref[...], preferred_element_type=jnp.float32)
                + b_ref[...], 0.0)
        o_ref[...] = h  # single (N, latent) store

    out = pl.pallas_call(
        kernel,
        out_shape=jax.ShapeDtypeStruct((N, latent_size), f32),
        grid=(1,),
        in_specs=in_specs,
        out_specs=pl.BlockSpec((N, latent_size), lambda i: (0, 0)),
        scratch_shapes=scratch,
        compiler_params=pltpu.CompilerParams(
            dimension_semantics=("arbitrary",)),
    )(*args)
    return out


# -------------------------- pure-JAX reference --------------------------

def reference_forward(x_nchw, params):
    hp = lax.Precision.HIGHEST
    x = jnp.transpose(x_nchw, (0, 2, 3, 1)).astype(jnp.float32)
    for p in params["conv_blocks"]:
        y = lax.conv_general_dilated(
            x, p["w"], (1, 1), "SAME",
            dimension_numbers=("NHWC", "HWIO", "NHWC"), precision=hp) + p["b"]
        y = (y - p["mean"]) / jnp.sqrt(p["var"] + EPS) * p["gamma"] + p["beta"]
        y = jnp.maximum(y, 0.0)
        x = lax.reduce_window(y, -jnp.inf, lax.max,
                              (1, 2, 2, 1), (1, 2, 2, 1), "VALID")
    n = x.shape[0]
    h = jnp.transpose(x, (0, 3, 1, 2)).reshape(n, -1)
    for p in params["mlp_layers"]:
        h = jnp.dot(h, p["w"], precision=hp) + p["b"]
        h = (h - p["mean"]) / jnp.sqrt(p["var"] + EPS) * p["gamma"] + p["beta"]
        h = jnp.maximum(h, 0.0)
    out = jnp.dot(h, params["latent"]["w"], precision=hp) + params["latent"]["b"]
    return jnp.maximum(out, 0.0)


# -------------------------- parameter init --------------------------

def init_params(key, conv_features_sizes, linear_layer_sizes, latent_size,
                connector_shape):
    def nrm(k, shape, s=0.1):
        return s * jax.random.normal(k, shape, jnp.float32)

    params = {"conv_blocks": [], "mlp_layers": []}
    cins = [1] + conv_features_sizes[:-1]
    for cin, cout in zip(cins, conv_features_sizes):
        key, k1, k2, k3, k4, k5, k6 = jax.random.split(key, 7)
        params["conv_blocks"].append(dict(
            w=nrm(k1, (3, 3, cin, cout)), b=nrm(k2, (cout,)),
            gamma=1.0 + nrm(k3, (cout,)), beta=nrm(k4, (cout,)),
            mean=nrm(k5, (cout,)), var=0.5 + 0.1 * jnp.abs(
                jax.random.normal(k6, (cout,), jnp.float32))))
    mlp_in = int(connector_shape[0] * connector_shape[1] * connector_shape[2])
    dims_in = [mlp_in] + linear_layer_sizes[:-1]
    for din, dout in zip(dims_in, linear_layer_sizes):
        key, k1, k2, k3, k4, k5, k6 = jax.random.split(key, 7)
        params["mlp_layers"].append(dict(
            w=nrm(k1, (din, dout)), b=nrm(k2, (dout,)),
            gamma=1.0 + nrm(k3, (dout,)), beta=nrm(k4, (dout,)),
            mean=nrm(k5, (dout,)), var=0.5 + 0.1 * jnp.abs(
                jax.random.normal(k6, (dout,), jnp.float32))))
    key, k1, k2 = jax.random.split(key, 3)
    params["latent"] = dict(w=nrm(k1, (linear_layer_sizes[-1], latent_size)),
                            b=nrm(k2, (latent_size,)))
    return params


# -------------------------- main --------------------------

if __name__ == "__main__":
    conv_features_sizes = [4, 8]      # two conv blocks: 1 -> 4 -> 8 channels
    linear_layer_sizes = [32, 16]
    latent_size = 8
    connector_shape = (8, 4, 4)       # (C, H, W) after the conv stack on 16x16

    key = jax.random.PRNGKey(0)
    key, kx, kp = jax.random.split(key, 3)
    x = jax.random.normal(kx, (2, 1, 16, 16), jnp.float32)  # NCHW like PyTorch
    params = init_params(kp, conv_features_sizes, linear_layer_sizes,
                         latent_size, connector_shape)

    out = jax.jit(encoder_forward)(x, params)
    out = jax.block_until_ready(out)
    assert out.shape == (2, latent_size), out.shape

    ref = reference_forward(x, params)
    err = float(jnp.max(jnp.abs(out - ref)))
    assert jnp.allclose(out, ref, atol=5e-4, rtol=5e-3), (
        f"mismatch vs reference: max abs err {err}")
    print("KERNEL_OK")
</pallas_src>

<mosaic_0001>
module attributes {stable_mosaic.version = 11 : i64} {
  func.func @kernel(%arg0: i32, %arg1: memref<2x1x16x16xf32, #tpu.memory_space<vmem>>, %arg2: memref<3x128x128xf32, #tpu.memory_space<vmem>>, %arg3: memref<1x128xf32, #tpu.memory_space<vmem>>, %arg4: memref<128x128xf32, #tpu.memory_space<vmem>>, %arg5: memref<128x128xf32, #tpu.memory_space<vmem>>, %arg6: memref<3x128x128xf32, #tpu.memory_space<vmem>>, %arg7: memref<1x128xf32, #tpu.memory_space<vmem>>, %arg8: memref<128x64xf32, #tpu.memory_space<vmem>>, %arg9: memref<128x64xf32, #tpu.memory_space<vmem>>, %arg10: memref<128x32xf32, #tpu.memory_space<vmem>>, %arg11: memref<1x32xf32, #tpu.memory_space<vmem>>, %arg12: memref<32x16xf32, #tpu.memory_space<vmem>>, %arg13: memref<1x16xf32, #tpu.memory_space<vmem>>, %arg14: memref<16x8xf32, #tpu.memory_space<vmem>>, %arg15: memref<1x8xf32, #tpu.memory_space<vmem>>, %arg16: memref<2x8xf32, #tpu.memory_space<vmem>>, %arg17: memref<18x128xf32, #tpu.memory_space<vmem>>, %arg18: memref<16x128xf32, #tpu.memory_space<vmem>>, %arg19: memref<10x128xf32, #tpu.memory_space<vmem>>, %arg20: memref<8x128xf32, #tpu.memory_space<vmem>>, %arg21: memref<2x128xf32, #tpu.memory_space<vmem>>) attributes {dimension_semantics = [#tpu.dimension_semantics<arbitrary>], iteration_bounds = array<i64: 1>, scalar_prefetch = 0 : i64, scratch_operands = 5 : i64, tpu.core_type = #tpu.core_type<tc>, window_params = [{pipeline_mode = #tpu.pipeline_mode<synchronous>, transform_indices = @transform_0, window_bounds = array<i64: 2, 1, 16, 16>}, {pipeline_mode = #tpu.pipeline_mode<synchronous>, transform_indices = @transform_1, window_bounds = array<i64: 3, 128, 128>}, {pipeline_mode = #tpu.pipeline_mode<synchronous>, transform_indices = @transform_2, window_bounds = array<i64: 1, 128>}, {pipeline_mode = #tpu.pipeline_mode<synchronous>, transform_indices = @transform_3, window_bounds = array<i64: 128, 128>}, {pipeline_mode = #tpu.pipeline_mode<synchronous>, transform_indices = @transform_4, window_bounds = array<i64: 128, 128>}, {pipeline_mode = #tpu.pipeline_mode<synchronous>, transform_indices = @transform_5, window_bounds = array<i64: 3, 128, 128>}, {pipeline_mode = #tpu.pipeline_mode<synchronous>, transform_indices = @transform_6, window_bounds = array<i64: 1, 128>}, {pipeline_mode = #tpu.pipeline_mode<synchronous>, transform_indices = @transform_7, window_bounds = array<i64: 128, 64>}, {pipeline_mode = #tpu.pipeline_mode<synchronous>, transform_indices = @transform_8, window_bounds = array<i64: 128, 64>}, {pipeline_mode = #tpu.pipeline_mode<synchronous>, transform_indices = @transform_9, window_bounds = array<i64: 128, 32>}, {pipeline_mode = #tpu.pipeline_mode<synchronous>, transform_indices = @transform_10, window_bounds = array<i64: 1, 32>}, {pipeline_mode = #tpu.pipeline_mode<synchronous>, transform_indices = @transform_11, window_bounds = array<i64: 32, 16>}, {pipeline_mode = #tpu.pipeline_mode<synchronous>, transform_indices = @transform_12, window_bounds = array<i64: 1, 16>}, {pipeline_mode = #tpu.pipeline_mode<synchronous>, transform_indices = @transform_13, window_bounds = array<i64: 16, 8>}, {pipeline_mode = #tpu.pipeline_mode<synchronous>, transform_indices = @transform_14, window_bounds = array<i64: 1, 8>}, {pipeline_mode = #tpu.pipeline_mode<synchronous>, transform_indices = @transform_15, window_bounds = array<i64: 2, 8>}]} {
    %cst = arith.constant 0.000000e+00 : f32
    %0 = vector.broadcast %cst : f32 to vector<18x128xf32>
    %c0 = arith.constant 0 : index
    %c0_0 = arith.constant 0 : index
    %1 = vector.load %arg17[%c0, %c0_0] : memref<18x128xf32, #tpu.memory_space<vmem>>, vector<18x128xf32>
    tpu.vector_store %arg17[%c0, %c0_0], %0 {strides = array<i32>} : memref<18x128xf32, #tpu.memory_space<vmem>>, vector<18x128xf32>,
    %c0_1 = arith.constant 0 : index
    %c0_2 = arith.constant 0 : index
    %c0_3 = arith.constant 0 : index
    %c0_4 = arith.constant 0 : index
    %2 = vector.load %arg1[%c0_1, %c0_2, %c0_3, %c0_4] : memref<2x1x16x16xf32, #tpu.memory_space<vmem>>, vector<1x1x16x16xf32>
    %3 = vector.shape_cast %2 : vector<1x1x16x16xf32> to vector<16x16xf32>
    %c1 = arith.constant 1 : index
    %c1_5 = arith.constant 1 : index
    %4 = vector.load %arg17[%c1, %c1_5] : memref<18x128xf32, #tpu.memory_space<vmem>>, vector<16x16xf32>
    tpu.vector_store %arg17[%c1, %c1_5], %3 {strides = array<i32>} : memref<18x128xf32, #tpu.memory_space<vmem>>, vector<16x16xf32>,
    %c1_6 = arith.constant 1 : index
    %c0_7 = arith.constant 0 : index
    %c0_8 = arith.constant 0 : index
    %c0_9 = arith.constant 0 : index
    %5 = vector.load %arg1[%c1_6, %c0_7, %c0_8, %c0_9] : memref<2x1x16x16xf32, #tpu.memory_space<vmem>>, vector<1x1x16x16xf32>
    %6 = vector.shape_cast %5 : vector<1x1x16x16xf32> to vector<16x16xf32>
    %c1_10 = arith.constant 1 : index
    %c19 = arith.constant 19 : index
    %7 = vector.load %arg17[%c1_10, %c19] : memref<18x128xf32, #tpu.memory_space<vmem>>, vector<16x16xf32>
    tpu.vector_store %arg17[%c1_10, %c19], %6 {strides = array<i32>} : memref<18x128xf32, #tpu.memory_space<vmem>>, vector<16x16xf32>,
    %cst_11 = arith.constant 0.000000e+00 : f32
    %8 = vector.broadcast %cst_11 : f32 to vector<16x128xf32>
    %c0_12 = arith.constant 0 : index
    %c0_13 = arith.constant 0 : index
    %9 = vector.load %arg17[%c0_12, %c0_13] : memref<18x128xf32, #tpu.memory_space<vmem>>, vector<16x128xf32>
    %c0_14 = arith.constant 0 : index
    %c0_15 = arith.constant 0 : index
    %c0_16 = arith.constant 0 : index
    %10 = vector.load %arg2[%c0_14, %c0_15, %c0_16] : memref<3x128x128xf32, #tpu.memory_space<vmem>>, vector<1x128x128xf32>
    %11 = vector.shape_cast %10 : vector<1x128x128xf32> to vector<128x128xf32>
    %cst_17 = arith.constant dense<0.000000e+00> : vector<16x128xf32>
    %12 = tpu.matmul %9, %11, %cst_17 {dimension_numbers = #tpu.dot_dimension_numbers<[1], [0], [0], [1], [0, 0, 1, 1], [], []>} : vector<16x128xf32>, vector<128x128xf32>, vector<16x128xf32> -> vector<16x128xf32>
    %13 = arith.addf %8, %12 : vector<16x128xf32>
    %c1_18 = arith.constant 1 : index
    %c0_19 = arith.constant 0 : index
    %14 = vector.load %arg17[%c1_18, %c0_19] : memref<18x128xf32, #tpu.memory_space<vmem>>, vector<16x128xf32>
    %c1_20 = arith.constant 1 : index
    %c0_21 = arith.constant 0 : index
    %c0_22 = arith.constant 0 : index
    %15 = vector.load %arg2[%c1_20, %c0_21, %c0_22] : memref<3x128x128xf32, #tpu.memory_space<vmem>>, vector<1x128x128xf32>
    %16 = vector.shape_cast %15 : vector<1x128x128xf32> to vector<128x128xf32>
    %cst_23 = arith.constant dense<0.000000e+00> : vector<16x128xf32>
    %17 = tpu.matmul %14, %16, %cst_23 {dimension_numbers = #tpu.dot_dimension_numbers<[1], [0], [0], [1], [0, 0, 1, 1], [], []>} : vector<16x128xf32>, vector<128x128xf32>, vector<16x128xf32> -> vector<16x128xf32>
    %18 = arith.addf %13, %17 : vector<16x128xf32>
    %c2 = arith.constant 2 : index
    %c0_24 = arith.constant 0 : index
    %19 = vector.load %arg17[%c2, %c0_24] : memref<18x128xf32, #tpu.memory_space<vmem>>, vector<16x128xf32>
    %c2_25 = arith.constant 2 : index
    %c0_26 = arith.constant 0 : index
    %c0_27 = arith.constant 0 : index
    %20 = vector.load %arg2[%c2_25, %c0_26, %c0_27] : memref<3x128x128xf32, #tpu.memory_space<vmem>>, vector<1x128x128xf32>
    %21 = vector.shape_cast %20 : vector<1x128x128xf32> to vector<128x128xf32>
    %cst_28 = arith.constant dense<0.000000e+00> : vector<16x128xf32>
    %22 = tpu.matmul %19, %21, %cst_28 {dimension_numbers = #tpu.dot_dimension_numbers<[1], [0], [0], [1], [0, 0, 1, 1], [], []>} : vector<16x128xf32>, vector<128x128xf32>, vector<16x128xf32> -> vector<16x128xf32>
    %23 = arith.addf %18, %22 : vector<16x128xf32>
    %c0_29 = arith.constant 0 : index
    %c0_30 = arith.constant 0 : index
    %24 = vector.load %arg3[%c0_29, %c0_30] : memref<1x128xf32, #tpu.memory_space<vmem>>, vector<1x128xf32>
    %25 = vector.broadcast %24 : vector<1x128xf32> to vector<16x128xf32>
    %26 = arith.addf %23, %25 : vector<16x128xf32>
    %cst_31 = arith.constant 0.000000e+00 : f32
    %27 = vector.broadcast %cst_31 : f32 to vector<16x128xf32>
    %28 = arith.maximumf %26, %27 : vector<16x128xf32>
    %c0_32 = arith.constant 0 : index
    %c0_33 = arith.constant 0 : index
    %29 = vector.load %arg18[%c0_32, %c0_33] : memref<16x128xf32, #tpu.memory_space<vmem>>, vector<16x128xf32>
    tpu.vector_store %arg18[%c0_32, %c0_33], %28 {strides = array<i32>} : memref<16x128xf32, #tpu.memory_space<vmem>>, vector<16x128xf32>,
    %c0_34 = arith.constant 0 : index
    %c0_35 = arith.constant 0 : index
    %30 = tpu.strided_load %arg18[%c0_34, %c0_35] {strides = array<i32: 2, 1>} : memref<16x128xf32, #tpu.memory_space<vmem>>, vector<8x128xf32>
    %c1_36 = arith.constant 1 : index
    %c0_37 = arith.constant 0 : index
    %31 = tpu.strided_load %arg18[%c1_36, %c0_37] {strides = array<i32: 2, 1>} : memref<16x128xf32, #tpu.memory_space<vmem>>, vector<8x128xf32>
    %32 = arith.maximumf %30, %31 : vector<8x128xf32>
    %c0_38 = arith.constant 0 : index
    %c0_39 = arith.constant 0 : index
    %33 = vector.load %arg4[%c0_38, %c0_39] : memref<128x128xf32, #tpu.memory_space<vmem>>, vector<128x128xf32>
    %cst_40 = arith.constant dense<0.000000e+00> : vector<8x128xf32>
    %34 = tpu.matmul %32, %33, %cst_40 {dimension_numbers = #tpu.dot_dimension_numbers<[1], [0], [0], [1], [0, 0, 1, 1], [], []>} : vector<8x128xf32>, vector<128x128xf32>, vector<8x128xf32> -> vector<8x128xf32>
    %c0_41 = arith.constant 0 : index
    %c0_42 = arith.constant 0 : index
    %35 = vector.load %arg5[%c0_41, %c0_42] : memref<128x128xf32, #tpu.memory_space<vmem>>, vector<128x128xf32>
    %cst_43 = arith.constant dense<0.000000e+00> : vector<8x128xf32>
    %36 = tpu.matmul %32, %35, %cst_43 {dimension_numbers = #tpu.dot_dimension_numbers<[1], [0], [0], [1], [0, 0, 1, 1], [], []>} : vector<8x128xf32>, vector<128x128xf32>, vector<8x128xf32> -> vector<8x128xf32>
    %37 = arith.maximumf %34, %36 : vector<8x128xf32>
    %cst_44 = arith.constant 0.000000e+00 : f32
    %38 = vector.broadcast %cst_44 : f32 to vector<10x128xf32>
    %c0_45 = arith.constant 0 : index
    %c0_46 = arith.constant 0 : index
    %39 = vector.load %arg19[%c0_45, %c0_46] : memref<10x128xf32, #tpu.memory_space<vmem>>, vector<10x128xf32>
    tpu.vector_store %arg19[%c0_45, %c0_46], %38 {strides = array<i32>} : memref<10x128xf32, #tpu.memory_space<vmem>>, vector<10x128xf32>,
    %c1_47 = arith.constant 1 : index
    %c0_48 = arith.constant 0 : index
    %40 = vector.load %arg19[%c1_47, %c0_48] : memref<10x128xf32, #tpu.memory_space<vmem>>, vector<8x128xf32>
    tpu.vector_store %arg19[%c1_47, %c0_48], %37 {strides = array<i32>} : memref<10x128xf32, #tpu.memory_space<vmem>>, vector<8x128xf32>,
    %cst_49 = arith.constant 0.000000e+00 : f32
    %41 = vector.broadcast %cst_49 : f32 to vector<8x128xf32>
    %c0_50 = arith.constant 0 : index
    %c0_51 = arith.constant 0 : index
    %42 = vector.load %arg19[%c0_50, %c0_51] : memref<10x128xf32, #tpu.memory_space<vmem>>, vector<8x128xf32>
    %c0_52 = arith.constant 0 : index
    %c0_53 = arith.constant 0 : index
    %c0_54 = arith.constant 0 : index
    %43 = vector.load %arg6[%c0_52, %c0_53, %c0_54] : memref<3x128x128xf32, #tpu.memory_space<vmem>>, vector<1x128x128xf32>
    %44 = vector.shape_cast %43 : vector<1x128x128xf32> to vector<128x128xf32>
    %cst_55 = arith.constant dense<0.000000e+00> : vector<8x128xf32>
    %45 = tpu.matmul %42, %44, %cst_55 {dimension_numbers = #tpu.dot_dimension_numbers<[1], [0], [0], [1], [0, 0, 1, 1], [], []>} : vector<8x128xf32>, vector<128x128xf32>, vector<8x128xf32> -> vector<8x128xf32>
    %46 = arith.addf %41, %45 : vector<8x128xf32>
    %c1_56 = arith.constant 1 : index
    %c0_57 = arith.constant 0 : index
    %47 = vector.load %arg19[%c1_56, %c0_57] : memref<10x128xf32, #tpu.memory_space<vmem>>, vector<8x128xf32>
    %c1_58 = arith.constant 1 : index
    %c0_59 = arith.constant 0 : index
    %c0_60 = arith.constant 0 : index
    %48 = vector.load %arg6[%c1_58, %c0_59, %c0_60] : memref<3x128x128xf32, #tpu.memory_space<vmem>>, vector<1x128x128xf32>
    %49 = vector.shape_cast %48 : vector<1x128x128xf32> to vector<128x128xf32>
    %cst_61 = arith.constant dense<0.000000e+00> : vector<8x128xf32>
    %50 = tpu.matmul %47, %49, %cst_61 {dimension_numbers = #tpu.dot_dimension_numbers<[1], [0], [0], [1], [0, 0, 1, 1], [], []>} : vector<8x128xf32>, vector<128x128xf32>, vector<8x128xf32> -> vector<8x128xf32>
    %51 = arith.addf %46, %50 : vector<8x128xf32>
    %c2_62 = arith.constant 2 : index
    %c0_63 = arith.constant 0 : index
    %52 = vector.load %arg19[%c2_62, %c0_63] : memref<10x128xf32, #tpu.memory_space<vmem>>, vector<8x128xf32>
    %c2_64 = arith.constant 2 : index
    %c0_65 = arith.constant 0 : index
    %c0_66 = arith.constant 0 : index
    %53 = vector.load %arg6[%c2_64, %c0_65, %c0_66] : memref<3x128x128xf32, #tpu.memory_space<vmem>>, vector<1x128x128xf32>
    %54 = vector.shape_cast %53 : vector<1x128x128xf32> to vector<128x128xf32>
    %cst_67 = arith.constant dense<0.000000e+00> : vector<8x128xf32>
    %55 = tpu.matmul %52, %54, %cst_67 {dimension_numbers = #tpu.dot_dimension_numbers<[1], [0], [0], [1], [0, 0, 1, 1], [], []>} : vector<8x128xf32>, vector<128x128xf32>, vector<8x128xf32> -> vector<8x128xf32>
    %56 = arith.addf %51, %55 : vector<8x128xf32>
    %c0_68 = arith.constant 0 : index
    %c0_69 = arith.constant 0 : index
    %57 = vector.load %arg7[%c0_68, %c0_69] : memref<1x128xf32, #tpu.memory_space<vmem>>, vector<1x128xf32>
    %58 = vector.broadcast %57 : vector<1x128xf32> to vector<8x128xf32>
    %59 = arith.addf %56, %58 : vector<8x128xf32>
    %cst_70 = arith.constant 0.000000e+00 : f32
    %60 = vector.broadcast %cst_70 : f32 to vector<8x128xf32>
    %61 = arith.maximumf %59, %60 : vector<8x128xf32>
    %c0_71 = arith.constant 0 : index
    %c0_72 = arith.constant 0 : index
    %62 = vector.load %arg20[%c0_71, %c0_72] : memref<8x128xf32, #tpu.memory_space<vmem>>, vector<8x128xf32>
    tpu.vector_store %arg20[%c0_71, %c0_72], %61 {strides = array<i32>} : memref<8x128xf32, #tpu.memory_space<vmem>>, vector<8x128xf32>,
    %c0_73 = arith.constant 0 : index
    %c0_74 = arith.constant 0 : index
    %63 = tpu.strided_load %arg20[%c0_73, %c0_74] {strides = array<i32: 2, 1>} : memref<8x128xf32, #tpu.memory_space<vmem>>, vector<4x128xf32>
    %c1_75 = arith.constant 1 : index
    %c0_76 = arith.constant 0 : index
    %64 = tpu.strided_load %arg20[%c1_75, %c0_76] {strides = array<i32: 2, 1>} : memref<8x128xf32, #tpu.memory_space<vmem>>, vector<4x128xf32>
    %65 = arith.maximumf %63, %64 : vector<4x128xf32>
    %c0_77 = arith.constant 0 : index
    %c0_78 = arith.constant 0 : index
    %66 = vector.load %arg8[%c0_77, %c0_78] : memref<128x64xf32, #tpu.memory_space<vmem>>, vector<128x64xf32>
    %cst_79 = arith.constant dense<0.000000e+00> : vector<4x64xf32>
    %67 = tpu.matmul %65, %66, %cst_79 {dimension_numbers = #tpu.dot_dimension_numbers<[1], [0], [0], [1], [0, 0, 1, 1], [], []>} : vector<4x128xf32>, vector<128x64xf32>, vector<4x64xf32> -> vector<4x64xf32>
    %c0_80 = arith.constant 0 : index
    %c0_81 = arith.constant 0 : index
    %68 = vector.load %arg9[%c0_80, %c0_81] : memref<128x64xf32, #tpu.memory_space<vmem>>, vector<128x64xf32>
    %cst_82 = arith.constant dense<0.000000e+00> : vector<4x64xf32>
    %69 = tpu.matmul %65, %68, %cst_82 {dimension_numbers = #tpu.dot_dimension_numbers<[1], [0], [0], [1], [0, 0, 1, 1], [], []>} : vector<4x128xf32>, vector<128x64xf32>, vector<4x64xf32> -> vector<4x64xf32>
    %70 = arith.maximumf %67, %69 : vector<4x64xf32>
    %71 = vector.extract_strided_slice %70 {offsets = [0, 0], sizes = [1, 32], strides = [1, 1]} : vector<4x64xf32> to vector<1x32xf32>
    %c0_83 = arith.constant 0 : index
    %c0_84 = arith.constant 0 : index
    %72 = vector.load %arg21[%c0_83, %c0_84] : memref<2x128xf32, #tpu.memory_space<vmem>>, vector<1x32xf32>
    tpu.vector_store %arg21[%c0_83, %c0_84], %71 {strides = array<i32>} : memref<2x128xf32, #tpu.memory_space<vmem>>, vector<1x32xf32>,
    %73 = vector.extract_strided_slice %70 {offsets = [0, 32], sizes = [1, 32], strides = [1, 1]} : vector<4x64xf32> to vector<1x32xf32>
    %c1_85 = arith.constant 1 : index
    %c0_86 = arith.constant 0 : index
    %74 = vector.load %arg21[%c1_85, %c0_86] : memref<2x128xf32, #tpu.memory_space<vmem>>, vector<1x32xf32>
    tpu.vector_store %arg21[%c1_85, %c0_86], %73 {strides = array<i32>} : memref<2x128xf32, #tpu.memory_space<vmem>>, vector<1x32xf32>,
    %75 = vector.extract_strided_slice %70 {offsets = [1, 0], sizes = [1, 32], strides = [1, 1]} : vector<4x64xf32> to vector<1x32xf32>
    %c0_87 = arith.constant 0 : index
    %c32 = arith.constant 32 : index
    %76 = vector.load %arg21[%c0_87, %c32] : memref<2x128xf32, #tpu.memory_space<vmem>>, vector<1x32xf32>
    tpu.vector_store %arg21[%c0_87, %c32], %75 {strides = array<i32>} : memref<2x128xf32, #tpu.memory_space<vmem>>, vector<1x32xf32>,
    %77 = vector.extract_strided_slice %70 {offsets = [1, 32], sizes = [1, 32], strides = [1, 1]} : vector<4x64xf32> to vector<1x32xf32>
    %c1_88 = arith.constant 1 : index
    %c32_89 = arith.constant 32 : index
    %78 = vector.load %arg21[%c1_88, %c32_89] : memref<2x128xf32, #tpu.memory_space<vmem>>, vector<1x32xf32>
    tpu.vector_store %arg21[%c1_88, %c32_89], %77 {strides = array<i32>} : memref<2x128xf32, #tpu.memory_space<vmem>>, vector<1x32xf32>,
    %79 = vector.extract_strided_slice %70 {offsets = [2, 0], sizes = [1, 32], strides = [1, 1]} : vector<4x64xf32> to vector<1x32xf32>
    %c0_90 = arith.constant 0 : index
    %c64 = arith.constant 64 : index
    %80 = vector.load %arg21[%c0_90, %c64] : memref<2x128xf32, #tpu.memory_space<vmem>>, vector<1x32xf32>
    tpu.vector_store %arg21[%c0_90, %c64], %79 {strides = array<i32>} : memref<2x128xf32, #tpu.memory_space<vmem>>, vector<1x32xf32>,
    %81 = vector.extract_strided_slice %70 {offsets = [2, 32], sizes = [1, 32], strides = [1, 1]} : vector<4x64xf32> to vector<1x32xf32>
    %c1_91 = arith.constant 1 : index
    %c64_92 = arith.constant 64 : index
    %82 = vector.load %arg21[%c1_91, %c64_92] : memref<2x128xf32, #tpu.memory_space<vmem>>, vector<1x32xf32>
    tpu.vector_store %arg21[%c1_91, %c64_92], %81 {strides = array<i32>} : memref<2x128xf32, #tpu.memory_space<vmem>>, vector<1x32xf32>,
    %83 = vector.extract_strided_slice %70 {offsets = [3, 0], sizes = [1, 32], strides = [1, 1]} : vector<4x64xf32> to vector<1x32xf32>
    %c0_93 = arith.constant 0 : index
    %c96 = arith.constant 96 : index
    %84 = vector.load %arg21[%c0_93, %c96] : memref<2x128xf32, #tpu.memory_space<vmem>>, vector<1x32xf32>
    tpu.vector_store %arg21[%c0_93, %c96], %83 {strides = array<i32>} : memref<2x128xf32, #tpu.memory_space<vmem>>, vector<1x32xf32>,
    %85 = vector.extract_strided_slice %70 {offsets = [3, 32], sizes = [1, 32], strides = [1, 1]} : vector<4x64xf32> to vector<1x32xf32>
    %c1_94 = arith.constant 1 : index
    %c96_95 = arith.constant 96 : index
    %86 = vector.load %arg21[%c1_94, %c96_95] : memref<2x128xf32, #tpu.memory_space<vmem>>, vector<1x32xf32>
    tpu.vector_store %arg21[%c1_94, %c96_95], %85 {strides = array<i32>} : memref<2x128xf32, #tpu.memory_space<vmem>>, vector<1x32xf32>,
    %c0_96 = arith.constant 0 : index
    %c0_97 = arith.constant 0 : index
    %87 = vector.load %arg21[%c0_96, %c0_97] : memref<2x128xf32, #tpu.memory_space<vmem>>, vector<2x128xf32>
    %c0_98 = arith.constant 0 : index
    %c0_99 = arith.constant 0 : index
    %88 = vector.load %arg10[%c0_98, %c0_99] : memref<128x32xf32, #tpu.memory_space<vmem>>, vector<128x32xf32>
    %cst_100 = arith.constant dense<0.000000e+00> : vector<2x32xf32>
    %89 = tpu.matmul %87, %88, %cst_100 {dimension_numbers = #tpu.dot_dimension_numbers<[1], [0], [0], [1], [0, 0, 1, 1], [], []>} : vector<2x128xf32>, vector<128x32xf32>, vector<2x32xf32> -> vector<2x32xf32>
    %c0_101 = arith.constant 0 : index
    %c0_102 = arith.constant 0 : index
    %90 = vector.load %arg11[%c0_101, %c0_102] : memref<1x32xf32, #tpu.memory_space<vmem>>, vector<1x32xf32>
    %91 = vector.broadcast %90 : vector<1x32xf32> to vector<2x32xf32>
    %92 = arith.addf %89, %91 : vector<2x32xf32>
    %cst_103 = arith.constant 0.000000e+00 : f32
    %93 = vector.broadcast %cst_103 : f32 to vector<2x32xf32>
    %94 = arith.maximumf %92, %93 : vector<2x32xf32>
    %c0_104 = arith.constant 0 : index
    %c0_105 = arith.constant 0 : index
    %95 = vector.load %arg12[%c0_104, %c0_105] : memref<32x16xf32, #tpu.memory_space<vmem>>, vector<32x16xf32>
    %cst_106 = arith.constant dense<0.000000e+00> : vector<2x16xf32>
    %96 = tpu.matmul %94, %95, %cst_106 {dimension_numbers = #tpu.dot_dimension_numbers<[1], [0], [0], [1], [0, 0, 1, 1], [], []>} : vector<2x32xf32>, vector<32x16xf32>, vector<2x16xf32> -> vector<2x16xf32>
    %c0_107 = arith.constant 0 : index
    %c0_108 = arith.constant 0 : index
    %97 = vector.load %arg13[%c0_107, %c0_108] : memref<1x16xf32, #tpu.memory_space<vmem>>, vector<1x16xf32>
    %98 = vector.broadcast %97 : vector<1x16xf32> to vector<2x16xf32>
    %99 = arith.addf %96, %98 : vector<2x16xf32>
    %cst_109 = arith.constant 0.000000e+00 : f32
    %100 = vector.broadcast %cst_109 : f32 to vector<2x16xf32>
    %101 = arith.maximumf %99, %100 : vector<2x16xf32>
    %c0_110 = arith.constant 0 : index
    %c0_111 = arith.constant 0 : index
    %102 = vector.load %arg14[%c0_110, %c0_111] : memref<16x8xf32, #tpu.memory_space<vmem>>, vector<16x8xf32>
    %cst_112 = arith.constant dense<0.000000e+00> : vector<2x8xf32>
    %103 = tpu.matmul %101, %102, %cst_112 {dimension_numbers = #tpu.dot_dimension_numbers<[1], [0], [0], [1], [0, 0, 1, 1], [], []>} : vector<2x16xf32>, vector<16x8xf32>, vector<2x8xf32> -> vector<2x8xf32>
    %c0_113 = arith.constant 0 : index
    %c0_114 = arith.constant 0 : index
    %104 = vector.load %arg15[%c0_113, %c0_114] : memref<1x8xf32, #tpu.memory_space<vmem>>, vector<1x8xf32>
    %105 = vector.broadcast %104 : vector<1x8xf32> to vector<2x8xf32>
    %106 = arith.addf %103, %105 : vector<2x8xf32>
    %cst_115 = arith.constant 0.000000e+00 : f32
    %107 = vector.broadcast %cst_115 : f32 to vector<2x8xf32>
    %108 = arith.maximumf %106, %107 : vector<2x8xf32>
    %c0_116 = arith.constant 0 : index
    %c0_117 = arith.constant 0 : index
    %109 = vector.load %arg16[%c0_116, %c0_117] : memref<2x8xf32, #tpu.memory_space<vmem>>, vector<2x8xf32>
    tpu.vector_store %arg16[%c0_116, %c0_117], %108 {strides = array<i32>} : memref<2x8xf32, #tpu.memory_space<vmem>>, vector<2x8xf32>,
    return
  }
  func.func @transform_0(%arg0: i32) -> (i32, i32, i32, i32) {
    %c0_i32 = arith.constant 0 : i32
    %c0_i32_0 = arith.constant 0 : i32
    %c0_i32_1 = arith.constant 0 : i32
    %c0_i32_2 = arith.constant 0 : i32
    %c0_i32_3 = arith.constant 0 : i32
    return %c0_i32, %c0_i32_0, %c0_i32_1, %c0_i32_2 : i32, i32, i32, i32
  }
  func.func @transform_1(%arg0: i32) -> (i32, i32, i32) {
    %c0_i32 = arith.constant 0 : i32
    %c0_i32_0 = arith.constant 0 : i32
    %c0_i32_1 = arith.constant 0 : i32
    %c0_i32_2 = arith.constant 0 : i32
    return %c0_i32, %c0_i32_0, %c0_i32_1 : i32, i32, i32
  }
  func.func @transform_2(%arg0: i32) -> (i32, i32) {
    %c0_i32 = arith.constant 0 : i32
    %c0_i32_0 = arith.constant 0 : i32
    %c0_i32_1 = arith.constant 0 : i32
    return %c0_i32, %c0_i32_0 : i32, i32
  }
  func.func @transform_3(%arg0: i32) -> (i32, i32) {
    %c0_i32 = arith.constant 0 : i32
    %c0_i32_0 = arith.constant 0 : i32
    %c0_i32_1 = arith.constant 0 : i32
    return %c0_i32, %c0_i32_0 : i32, i32
  }
  func.func @transform_4(%arg0: i32) -> (i32, i32) {
    %c0_i32 = arith.constant 0 : i32
    %c0_i32_0 = arith.constant 0 : i32
    %c0_i32_1 = arith.constant 0 : i32
    return %c0_i32, %c0_i32_0 : i32, i32
  }
  func.func @transform_5(%arg0: i32) -> (i32, i32, i32) {
    %c0_i32 = arith.constant 0 : i32
    %c0_i32_0 = arith.constant 0 : i32
    %c0_i32_1 = arith.constant 0 : i32
    %c0_i32_2 = arith.constant 0 : i32
    return %c0_i32, %c0_i32_0, %c0_i32_1 : i32, i32, i32
  }
  func.func @transform_6(%arg0: i32) -> (i32, i32) {
    %c0_i32 = arith.constant 0 : i32
    %c0_i32_0 = arith.constant 0 : i32
    %c0_i32_1 = arith.constant 0 : i32
    return %c0_i32, %c0_i32_0 : i32, i32
  }
  func.func @transform_7(%arg0: i32) -> (i32, i32) {
    %c0_i32 = arith.constant 0 : i32
    %c0_i32_0 = arith.constant 0 : i32
    %c0_i32_1 = arith.constant 0 : i32
    return %c0_i32, %c0_i32_0 : i32, i32
  }
  func.func @transform_8(%arg0: i32) -> (i32, i32) {
    %c0_i32 = arith.constant 0 : i32
    %c0_i32_0 = arith.constant 0 : i32
    %c0_i32_1 = arith.constant 0 : i32
    return %c0_i32, %c0_i32_0 : i32, i32
  }
  func.func @transform_9(%arg0: i32) -> (i32, i32) {
    %c0_i32 = arith.constant 0 : i32
    %c0_i32_0 = arith.constant 0 : i32
    %c0_i32_1 = arith.constant 0 : i32
    return %c0_i32, %c0_i32_0 : i32, i32
  }
  func.func @transform_10(%arg0: i32) -> (i32, i32) {
    %c0_i32 = arith.constant 0 : i32
    %c0_i32_0 = arith.constant 0 : i32
    %c0_i32_1 = arith.constant 0 : i32
    return %c0_i32, %c0_i32_0 : i32, i32
  }
  func.func @transform_11(%arg0: i32) -> (i32, i32) {
    %c0_i32 = arith.constant 0 : i32
    %c0_i32_0 = arith.constant 0 : i32
    %c0_i32_1 = arith.constant 0 : i32
    return %c0_i32, %c0_i32_0 : i32, i32
  }
  func.func @transform_12(%arg0: i32) -> (i32, i32) {
    %c0_i32 = arith.constant 0 : i32
    %c0_i32_0 = arith.constant 0 : i32
    %c0_i32_1 = arith.constant 0 : i32
    return %c0_i32, %c0_i32_0 : i32, i32
  }
  func.func @transform_13(%arg0: i32) -> (i32, i32) {
    %c0_i32 = arith.constant 0 : i32
    %c0_i32_0 = arith.constant 0 : i32
    %c0_i32_1 = arith.constant 0 : i32
    return %c0_i32, %c0_i32_0 : i32, i32
  }
  func.func @transform_14(%arg0: i32) -> (i32, i32) {
    %c0_i32 = arith.constant 0 : i32
    %c0_i32_0 = arith.constant 0 : i32
    %c0_i32_1 = arith.constant 0 : i32
    return %c0_i32, %c0_i32_0 : i32, i32
  }
  func.func @transform_15(%arg0: i32) -> (i32, i32) {
    %c0_i32 = arith.constant 0 : i32
    %c0_i32_0 = arith.constant 0 : i32
    %c0_i32_1 = arith.constant 0 : i32
    return %c0_i32, %c0_i32_0 : i32, i32
  }
}

</mosaic_0001>

<bundles_post_ra>
// kernel: mul.32
= control target key start
LH: loop header
LB: loop body
LE: loop exit
PB: predicated region body
PF: predicated region fallthrough
CT: control target
= control target key end

     0   :  { %vm4_vm0 = vcmask 1047556   ;;  %s539_s14 = smov 56   ;;  %s540_s10 = smov 48   ;;  %vm6_vm1 = vcmask 64512   ;;  %vm52_vm2 = vcmask 523712   ;;  %vm106_vm3 = vcmask 458112   ;;  %s975_s0 = inlined_call_operand.vmem [shape: f32[10,4,8,8], index: 0, kind: input, shape index: {}]   ;;  %s976_s1 = inlined_call_operand.vmem [shape: f32[40,64], index: 1, kind: output, shape index: {}]  }
   0x1   :  { %v434_v0 = vld [vmem:[%s975_s0 + $0x7] ss:$8 sm:$0xf]   ;;  %v448_v14 = vld [vmem:[%s975_s0 + $0x6] ss:$8 sm:$0xf]  }
   0x2   :  { %v435_v1 = vld [vmem:[%s975_s0 + $0x7] ss:$8 sm:$0xf0]   ;;  %v449_v15 = vld [vmem:[%s975_s0 + $0x6] ss:$8 sm:$0xf0]  }
   0x3   :  { %v49_v2 = vsel %vm4_vm0, %v435_v1, %v434_v0  ;;  %v439_v3 = vld [vmem:[%s975_s0 + $0x47] ss:$8 sm:$0xf]   ;;  %v103_v17 = vsel %vm4_vm0, %v449_v15, %v448_v14  ;;  %v450_v18 = vld [vmem:[%s975_s0 + $0x106] ss:$8 sm:$0xf]  }
   0x4   :  { %v440_v4 = vld [vmem:[%s975_s0 + $0x47] ss:$8 sm:$0xf0]   ;;  %50 = vrot.lane.b32.xlu0 %v49_v2, %s539_s14  ;;  %v451_v19 = vld [vmem:[%s975_s0 + $0x106] ss:$8 sm:$0xf0]  }
   0x5   :  { %v70_v5 = vsel %vm4_vm0, %v440_v4, %v439_v3  ;;  %v436_v6 = vld [vmem:[%s975_s0 + $0x107] ss:$8 sm:$0xf]   ;;  %v453_v20 = vld [vmem:[%s975_s0 + $0x46] ss:$8 sm:$0xf]   ;;  %v113_v22 = vsel %vm4_vm0, %v451_v19, %v450_v18 }
   0x6   :  { %v437_v7 = vld [vmem:[%s975_s0 + $0x107] ss:$8 sm:$0xf0]   ;;  %71 = vrot.lane.b32.xlu1 %v70_v5, %s539_s14  ;;  %v454_v21 = vld [vmem:[%s975_s0 + $0x46] ss:$8 sm:$0xf0]  }
   0x7   :  { %v59_v8 = vsel %vm4_vm0, %v437_v7, %v436_v6  ;;  %v442_v9 = vld [vmem:[%s975_s0 + $0x87] ss:$8 sm:$0xf]   ;;  %v124_v23 = vsel %vm4_vm0, %v454_v21, %v453_v20  ;;  %v456_v24 = vld [vmem:[%s975_s0 + $0x86] ss:$8 sm:$0xf]  }
   0x8   :  { %v443_v10 = vld [vmem:[%s975_s0 + $0x87] ss:$8 sm:$0xf0]   ;;  %60 = vrot.lane.b32.xlu0 %v59_v8, %s539_s14  ;;  %v457_v25 = vld [vmem:[%s975_s0 + $0x86] ss:$8 sm:$0xf0]  }
   0x9   :  { %v81_v11 = vsel %vm4_vm0, %v443_v10, %v442_v9  ;;  %v445_v12 = vld [vmem:[%s975_s0 + $0xc7] ss:$8 sm:$0xf]   ;;  %v459_v26 = vld [vmem:[%s975_s0 + $0xc6] ss:$8 sm:$0xf]   ;;  %v135_v28 = vsel %vm4_vm0, %v457_v25, %v456_v24 }
   0xa   :  { %v446_v13 = vld [vmem:[%s975_s0 + $0xc7] ss:$8 sm:$0xf0]   ;;  %82 = vrot.lane.b32.xlu1 %v81_v11, %s539_s14  ;;  %v460_v27 = vld [vmem:[%s975_s0 + $0xc6] ss:$8 sm:$0xf0]  }
   0xb   :  { %v92_v16 = vsel %vm4_vm0, %v446_v13, %v445_v12  ;;  %v146_v29 = vsel %vm4_vm0, %v460_v27, %v459_v26  ;;  %v462_v30 = vld [vmem:[%s975_s0 + $0x5] ss:$8 sm:$0xf]   ;;  %s541_s6 = smov 40   ;;  %s542_s23 = smov 32   ;;  %vm160_vm4 = vcmask 392512  }
   0xc   :  { %93 = vrot.lane.b32.xlu0 %v92_v16, %s539_s14  ;;  %v463_v31 = vld [vmem:[%s975_s0 + $0x5] ss:$8 sm:$0xf0]   ;;  %v476_v44 = vld [vmem:[%s975_s0 + $0x4] ss:$8 sm:$0xf]  }
   0xd   :  { %v464_v32 = vld [vmem:[%s975_s0 + $0x105] ss:$8 sm:$0xf]   ;;  %v157_v34 = vsel %vm4_vm0, %v463_v31, %v462_v30  ;;  %v477_v45 = vld [vmem:[%s975_s0 + $0x4] ss:$8 sm:$0xf0]  }
   0xe   :  { %104 = vrot.lane.b32.xlu1 %v103_v17, %s540_s10  ;;  %v465_v33 = vld [vmem:[%s975_s0 + $0x105] ss:$8 sm:$0xf0]   ;;  %v211_v47 = vsel %vm4_vm0, %v477_v45, %v476_v44  ;;  %v478_v48 = vld [vmem:[%s975_s0 + $0x104] ss:$8 sm:$0xf]  }
   0xf   :  { %v167_v35 = vsel %vm4_vm0, %v465_v33, %v464_v32  ;;  %v467_v36 = vld [vmem:[%s975_s0 + $0x45] ss:$8 sm:$0xf]   ;;  %v479_v49 = vld [vmem:[%s975_s0 + $0x104] ss:$8 sm:$0xf0]  }
  0x10   :  { %114 = vrot.lane.b32.xlu0 %v113_v22, %s540_s10  ;;  %v468_v37 = vld [vmem:[%s975_s0 + $0x45] ss:$8 sm:$0xf0]   ;;  %v481_v50 = vld [vmem:[%s975_s0 + $0x44] ss:$8 sm:$0xf]   ;;  %v221_v52 = vsel %vm4_vm0, %v479_v49, %v478_v48 }
  0x11   :  { %v470_v38 = vld [vmem:[%s975_s0 + $0x85] ss:$8 sm:$0xf]   ;;  %v178_v40 = vsel %vm4_vm0, %v468_v37, %v467_v36  ;;  %v482_v51 = vld [vmem:[%s975_s0 + $0x44] ss:$8 sm:$0xf0]  }
  0x12   :  { %125 = vrot.lane.b32.xlu1 %v124_v23, %s540_s10  ;;  %v471_v39 = vld [vmem:[%s975_s0 + $0x85] ss:$8 sm:$0xf0]   ;;  %v484_v53 = vld [vmem:[%s975_s0 + $0x84] ss:$8 sm:$0xf]   ;;  %v232_v55 = vsel %vm4_vm0, %v482_v51, %v481_v50 }
  0x13   :  { %v189_v41 = vsel %vm4_vm0, %v471_v39, %v470_v38  ;;  %v473_v42 = vld [vmem:[%s975_s0 + $0xc5] ss:$8 sm:$0xf]   ;;  %v485_v54 = vld [vmem:[%s975_s0 + $0x84] ss:$8 sm:$0xf0]  }
  0x14   :  { %136 = vrot.lane.b32.xlu0 %v135_v28, %s540_s10  ;;  %v474_v43 = vld [vmem:[%s975_s0 + $0xc5] ss:$8 sm:$0xf0]   ;;  %v487_v56 = vld [vmem:[%s975_s0 + $0xc4] ss:$8 sm:$0xf]   ;;  %v243_v63 = vsel %vm4_vm0, %v485_v54, %v484_v53 }
  0x15   :  { %v200_v46 = vsel %vm4_vm0, %v474_v43, %v473_v42  ;;  %v488_v57 = vld [vmem:[%s975_s0 + $0xc4] ss:$8 sm:$0xf0]   ;;  %v523_v58 = vld [vmem:[%s975_s0 + $0x41] ss:$8 sm:$0xf]  }
  0x16   :  { %147 = vrot.lane.b32.xlu1 %v146_v29, %s540_s10  ;;  %v490_v59 = vld [vmem:[%s975_s0 + $0x3] ss:$8 sm:$0xf]   ;;  %v524_v61 = vld [vmem:[%s975_s0 + $0x41] ss:$8 sm:$0xf0]   ;;  %v254_v5 = vsel %vm4_vm0, %v488_v57, %v487_v56 }
  0x17   :  { %v491_v60 = vld [vmem:[%s975_s0 + $0x3] ss:$8 sm:$0xf0]   ;;  %v526_v62 = vld [vmem:[%s975_s0 + $0x81] ss:$8 sm:$0xf]   ;;  %v720_v2 = vsel %vm4_vm0, %v524_v61, %v523_v58 }
  0x18   :  { %158 = vrot.lane.b32.xlu0 %v157_v34, %s541_s6  ;;  %v492_v0 = vld [vmem:[%s975_s0 + $0x103] ss:$8 sm:$0xf]   ;;  %v527_v3 = vld [vmem:[%s975_s0 + $0x81] ss:$8 sm:$0xf0]   ;;  %v265_v17 = vsel %vm4_vm0, %v491_v60, %v490_v59 }
  0x19   :  { %v493_v1 = vld [vmem:[%s975_s0 + $0x103] ss:$8 sm:$0xf0]   ;;  %v529_v4 = vld [vmem:[%s975_s0 + $0xc1] ss:$8 sm:$0xf]   ;;  %v730_v6 = vsel %vm4_vm0, %v527_v3, %v526_v62 }
  0x1a   :  { %168 = vrot.lane.b32.xlu1 %v167_v35, %s541_s6  ;;  %v530_v7 = vld [vmem:[%s975_s0 + $0xc1] ss:$8 sm:$0xf0]   ;;  %v2_v8 = vld [vmem:[%s975_s0] ss:$8 sm:$0xf]   ;;  %v275_v22 = vsel %vm4_vm0, %v493_v1, %v492_v0 }
  0x1b   :  { %v739_v9 = vsel %vm4_vm0, %v530_v7, %v529_v4  ;;  %v3_v10 = vld [vmem:[%s975_s0] ss:$8 sm:$0xf0]   ;;  %v495_v12 = vld [vmem:[%s975_s0 + $0x43] ss:$8 sm:$0xf]  }
  0x1c   :  { %179 = vrot.lane.b32.xlu0 %v178_v40, %s541_s6  ;;  %v422_v11 = vld [vmem:[%s975_s0 + $0x40] ss:$8 sm:$0xf]   ;;  %v496_v13 = vld [vmem:[%s975_s0 + $0x43] ss:$8 sm:$0xf0]   ;;  %v5_v14 = vsel %vm4_vm0, %v3_v10, %v2_v8 }
  0x1d   :  { %v423_v15 = vld [vmem:[%s975_s0 + $0x40] ss:$8 sm:$0xf0]   ;;  %v498_v18 = vld [vmem:[%s975_s0 + $0x83] ss:$8 sm:$0xf]   ;;  %v286_v30 = vsel %vm4_vm0, %v496_v13, %v495_v12 }
  0x1e   :  { %190 = vrot.lane.b32.xlu1 %v189_v41, %s541_s6  ;;  %v431_v16 = vld [vmem:[%s975_s0 + $0x100] ss:$8 sm:$0xf]   ;;  %7 = vst.msk [vmem:[%s976_s1] sm:$0xff] %vm6_vm1, %v5_v14   ;;  %v13_v19 = vsel %vm4_vm0, %v423_v15, %v422_v11  ;;  %s543_s29 = smov 24   ;;  %s544_s20 = smov 16  }
  0x1f   :  { %v432_v20 = vld [vmem:[%s975_s0 + $0x100] ss:$8 sm:$0xf0]   ;;  %424 = vst.msk [vmem:[%s976_s1 + $0x8] sm:$0xff] %vm6_vm1, %v13_v19   ;;  %vm214_vm5 = vcmask 326912   ;;  %vm268_vm6 = vcmask 261312  }
  0x20   :  { %201 = vrot.lane.b32.xlu0 %v200_v46, %s541_s6  ;;  %v425_v21 = vld [vmem:[%s975_s0 + $0x80] ss:$8 sm:$0xf]   ;;  %v40_v23 = vsel %vm4_vm0, %v432_v20, %v431_v16  ;;  %v499_v26 = vld [vmem:[%s975_s0 + $0x83] ss:$8 sm:$0xf0]  }
  0x21   :  { %v426_v24 = vld [vmem:[%s975_s0 + $0x80] ss:$8 sm:$0xf0]   ;;  %433 = vst.msk [vmem:[%s976_s1 + $0x20] sm:$0xff] %vm6_vm1, %v40_v23   ;;  %v297_v31 = vsel %vm4_vm0, %v499_v26, %v498_v18  ;;  %vm322_vm7 = vcmask 195712   ;;  %vm376_vm8 = vcmask 130112  }
  0x22   :  { %212 = vrot.lane.b32.xlu1 %v211_v47, %s542_s23  ;;  %v428_v25 = vld [vmem:[%s975_s0 + $0xc0] ss:$8 sm:$0xf]   ;;  %v22_v27 = vsel %vm4_vm0, %v426_v24, %v425_v21  ;;  %v501_v32 = vld [vmem:[%s975_s0 + $0xc3] ss:$8 sm:$0xf]  }
  0x23   :  { %v429_v28 = vld [vmem:[%s975_s0 + $0xc0] ss:$8 sm:$0xf0]   ;;  %427 = vst.msk [vmem:[%s976_s1 + $0x10] sm:$0xff] %vm6_vm1, %v22_v27  }
  0x24   :  { %222 = vrot.lane.b32.xlu0 %v221_v52, %s542_s23  ;;  %v31_v29 = vsel %vm4_vm0, %v429_v28, %v428_v25  ;;  %v502_v33 = vld [vmem:[%s975_s0 + $0xc3] ss:$8 sm:$0xf0]   ;;  %v504_v34 = vld [vmem:[%s975_s0 + $0x2] ss:$8 sm:$0xf]  }
  0x25   :  { %430 = vst.msk [vmem:[%s976_s1 + $0x18] sm:$0xff] %vm6_vm1, %v31_v29   ;;  %v505_v35 = vld [vmem:[%s975_s0 + $0x2] ss:$8 sm:$0xf0]   ;;  %v308_v36 = vsel %vm4_vm0, %v502_v33, %v501_v32 }
  0x26   :  { %233 = vrot.lane.b32.xlu1 %v232_v55, %s542_s23  ;;  %v319_v37 = vsel %vm4_vm0, %v505_v35, %v504_v34  ;;  %v506_v38 = vld [vmem:[%s975_s0 + $0x102] ss:$8 sm:$0xf]   ;;  %v518_v50 = vld [vmem:[%s975_s0 + $0x1] ss:$8 sm:$0xf]  }
  0x27   :  { %v507_v39 = vld [vmem:[%s975_s0 + $0x102] ss:$8 sm:$0xf0]   ;;  %v519_v51 = vld [vmem:[%s975_s0 + $0x1] ss:$8 sm:$0xf0]  }
  0x28   :  { %244 = vrot.lane.b32.xlu0 %v243_v63, %s542_s23  ;;  %v509_v40 = vld [vmem:[%s975_s0 + $0x42] ss:$8 sm:$0xf]   ;;  %v329_v42 = vsel %vm4_vm0, %v507_v39, %v506_v38  ;;  %v520_v52 = vld [vmem:[%s975_s0 + $0x101] ss:$8 sm:$0xf]   ;;  %v373_v54 = vsel %vm4_vm0, %v519_v51, %v518_v50 }
  0x29   :  { %v510_v41 = vld [vmem:[%s975_s0 + $0x42] ss:$8 sm:$0xf0]   ;;  %v521_v53 = vld [vmem:[%s975_s0 + $0x101] ss:$8 sm:$0xf0]  }
  0x2a   :  { %255 = vrot.lane.b32.xlu1 %v254_v5, %s542_s23  ;;  %v340_v43 = vsel %vm4_vm0, %v510_v41, %v509_v40  ;;  %v512_v44 = vld [vmem:[%s975_s0 + $0x82] ss:$8 sm:$0xf]   ;;  %v383_v55 = vsel %vm4_vm0, %v521_v53, %v520_v52 }
  0x2b   :  { %v513_v45 = vld [vmem:[%s975_s0 + $0x82] ss:$8 sm:$0xf0]  }
  0x2c   :  { %266 = vrot.lane.b32.xlu0 %v265_v17, %s543_s29  ;;  %v515_v46 = vld [vmem:[%s975_s0 + $0xc2] ss:$8 sm:$0xf]   ;;  %v351_v48 = vsel %vm4_vm0, %v513_v45, %v512_v44 }
  0x2d   :  { %v516_v47 = vld [vmem:[%s975_s0 + $0xc2] ss:$8 sm:$0xf0]   ;;  %s545_s0 = smov 8  }
  0x2e   :  { %276 = vrot.lane.b32.xlu1 %v275_v22, %s543_s29  ;;  %v362_v49 = vsel %vm4_vm0, %v516_v47, %v515_v46 }
  0x30   :  { %287 = vrot.lane.b32.xlu0 %v286_v30, %s543_s29 }
  0x32   :  { %298 = vrot.lane.b32.xlu1 %v297_v31, %s543_s29 }
  0x34   :  { %309 = vrot.lane.b32.xlu0 %v308_v36, %s543_s29 }
  0x36   :  { %320 = vrot.lane.b32.xlu1 %v319_v37, %s544_s20 }
  0x38   :  { %330 = vrot.lane.b32.xlu0 %v329_v42, %s544_s20 }
  0x3a   :  { %341 = vrot.lane.b32.xlu1 %v340_v43, %s544_s20 }
  0x3c   :  { %352 = vrot.lane.b32.xlu0 %v351_v48, %s544_s20 }
  0x3e   :  { %363 = vrot.lane.b32.xlu1 %v362_v49, %s544_s20 }
  0x40   :  { %374 = vrot.lane.b32.xlu0 %v373_v54, %s545_s0 }
  0x42   :  { %384 = vrot.lane.b32.xlu1 %v383_v55, %s545_s0 }
  0x44   :  { %395 = vrot.lane.b32.xlu0 %v720_v2, %s545_s0 }
  0x46   :  { %406 = vrot.lane.b32.xlu1 %v730_v6, %s545_s0 }
  0x48   :  { %417 = vrot.lane.b32.xlu0 %v739_v9, %s545_s0 }
  0x76   :  { %v51_v56 = vpop.permute.xlu0 %50  }
  0x77   :  { %53 = vst.msk [vmem:[%s976_s1] sm:$0xff] %vm52_vm2, %v51_v56  }
  0x78   :  { %v72_v57 = vpop.permute.xlu1 %71  }
  0x79   :  { %441 = vst.msk [vmem:[%s976_s1 + $0x8] sm:$0xff] %vm52_vm2, %v72_v57  }
  0x7a   :  { %v61_v58 = vpop.permute.xlu0 %60  }
  0x7b   :  { %438 = vst.msk [vmem:[%s976_s1 + $0x20] sm:$0xff] %vm52_vm2, %v61_v58  }
  0x7c   :  { %v83_v59 = vpop.permute.xlu1 %82  }
  0x7d   :  { %444 = vst.msk [vmem:[%s976_s1 + $0x10] sm:$0xff] %vm52_vm2, %v83_v59  }
  0x7e   :  { %v94_v60 = vpop.permute.xlu0 %93  }
  0x7f   :  { %447 = vst.msk [vmem:[%s976_s1 + $0x18] sm:$0xff] %vm52_vm2, %v94_v60  }
  0x80   :  { %v105_v61 = vpop.permute.xlu1 %104  }
  0x81   :  { %107 = vst.msk [vmem:[%s976_s1] sm:$0xff] %vm106_vm3, %v105_v61  }
  0x82   :  { %v115_v62 = vpop.permute.xlu0 %114  }
  0x83   :  { %452 = vst.msk [vmem:[%s976_s1 + $0x20] sm:$0xff] %vm106_vm3, %v115_v62  }
  0x84   :  { %v126_v63 = vpop.permute.xlu1 %125  }
  0x85   :  { %455 = vst.msk [vmem:[%s976_s1 + $0x8] sm:$0xff] %vm106_vm3, %v126_v63  }
  0x86   :  { %v137_v0 = vpop.permute.xlu0 %136  }
  0x87   :  { %458 = vst.msk [vmem:[%s976_s1 + $0x10] sm:$0xff] %vm106_vm3, %v137_v0  }
  0x88   :  { %v148_v1 = vpop.permute.xlu1 %147  }
  0x89   :  { %461 = vst.msk [vmem:[%s976_s1 + $0x18] sm:$0xff] %vm106_vm3, %v148_v1  }
  0x8a   :  { %v159_v2 = vpop.permute.xlu0 %158  }
  0x8b   :  { %161 = vst.msk [vmem:[%s976_s1] sm:$0xff] %vm160_vm4, %v159_v2  }
  0x8c   :  { %v169_v3 = vpop.permute.xlu1 %168  }
  0x8d   :  { %466 = vst.msk [vmem:[%s976_s1 + $0x20] sm:$0xff] %vm160_vm4, %v169_v3  }
  0x8e   :  { %v180_v4 = vpop.permute.xlu0 %179  }
  0x8f   :  { %469 = vst.msk [vmem:[%s976_s1 + $0x8] sm:$0xff] %vm160_vm4, %v180_v4  }
  0x90   :  { %v191_v5 = vpop.permute.xlu1 %190  }
  0x91   :  { %472 = vst.msk [vmem:[%s976_s1 + $0x10] sm:$0xff] %vm160_vm4, %v191_v5  }
  0x92   :  { %v202_v6 = vpop.permute.xlu0 %201  }
  0x93   :  { %475 = vst.msk [vmem:[%s976_s1 + $0x18] sm:$0xff] %vm160_vm4, %v202_v6  }
  0x94   :  { %v213_v7 = vpop.permute.xlu1 %212  }
  0x95   :  { %215 = vst.msk [vmem:[%s976_s1] sm:$0xff] %vm214_vm5, %v213_v7  }
  0x96   :  { %v223_v8 = vpop.permute.xlu0 %222  }
  0x97   :  { %480 = vst.msk [vmem:[%s976_s1 + $0x20] sm:$0xff] %vm214_vm5, %v223_v8  }
  0x98   :  { %v234_v9 = vpop.permute.xlu1 %233  }
  0x99   :  { %483 = vst.msk [vmem:[%s976_s1 + $0x8] sm:$0xff] %vm214_vm5, %v234_v9  }
  0x9a   :  { %v245_v10 = vpop.permute.xlu0 %244  }
  0x9b   :  { %486 = vst.msk [vmem:[%s976_s1 + $0x10] sm:$0xff] %vm214_vm5, %v245_v10  }
  0x9c   :  { %v256_v11 = vpop.permute.xlu1 %255  }
  0x9d   :  { %489 = vst.msk [vmem:[%s976_s1 + $0x18] sm:$0xff] %vm214_vm5, %v256_v11  }
  0x9e   :  { %v267_v12 = vpop.permute.xlu0 %266  }
  0x9f   :  { %269 = vst.msk [vmem:[%s976_s1] sm:$0xff] %vm268_vm6, %v267_v12  }
  0xa0   :  { %v277_v13 = vpop.permute.xlu1 %276  }
  0xa1   :  { %494 = vst.msk [vmem:[%s976_s1 + $0x20] sm:$0xff] %vm268_vm6, %v277_v13  }
  0xa2   :  { %v288_v14 = vpop.permute.xlu0 %287  }
  0xa3   :  { %497 = vst.msk [vmem:[%s976_s1 + $0x8] sm:$0xff] %vm268_vm6, %v288_v14  }
  0xa4   :  { %v299_v15 = vpop.permute.xlu1 %298  }
  0xa5   :  { %500 = vst.msk [vmem:[%s976_s1 + $0x10] sm:$0xff] %vm268_vm6, %v299_v15  }
  0xa6   :  { %v310_v16 = vpop.permute.xlu0 %309  }
  0xa7   :  { %503 = vst.msk [vmem:[%s976_s1 + $0x18] sm:$0xff] %vm268_vm6, %v310_v16  }
  0xa8   :  { %v321_v17 = vpop.permute.xlu1 %320  }
  0xa9   :  { %323 = vst.msk [vmem:[%s976_s1] sm:$0xff] %vm322_vm7, %v321_v17  }
  0xaa   :  { %v331_v18 = vpop.permute.xlu0 %330  }
  0xab   :  { %508 = vst.msk [vmem:[%s976_s1 + $0x20] sm:$0xff] %vm322_vm7, %v331_v18  }
  0xac   :  { %v342_v19 = vpop.permute.xlu1 %341  }
  0xad   :  { %511 = vst.msk [vmem:[%s976_s1 + $0x8] sm:$0xff] %vm322_vm7, %v342_v19  }
  0xae   :  { %v353_v20 = vpop.permute.xlu0 %352  }
  0xaf   :  { %514 = vst.msk [vmem:[%s976_s1 + $0x10] sm:$0xff] %vm322_vm7, %v353_v20  }
  0xb0   :  { %v364_v21 = vpop.permute.xlu1 %363  }
  0xb1   :  { %517 = vst.msk [vmem:[%s976_s1 + $0x18] sm:$0xff] %vm322_vm7, %v364_v21  }
  0xb2   :  { %v375_v22 = vpop.permute.xlu0 %374  }
  0xb3   :  { %377 = vst.msk [vmem:[%s976_s1] sm:$0xff] %vm376_vm8, %v375_v22  }
  0xb4   :  { %v385_v23 = vpop.permute.xlu1 %384  }
  0xb5   :  { %522 = vst.msk [vmem:[%s976_s1 + $0x20] sm:$0xff] %vm376_vm8, %v385_v23  }
  0xb6   :  { %v396_v24 = vpop.permute.xlu0 %395  }
  0xb7   :  { %525 = vst.msk [vmem:[%s976_s1 + $0x8] sm:$0xff] %vm376_vm8, %v396_v24  }
  0xb8   :  { %v407_v25 = vpop.permute.xlu1 %406  }
  0xb9   :  { %528 = vst.msk [vmem:[%s976_s1 + $0x10] sm:$0xff] %vm376_vm8, %v407_v25  }
  0xba   :  { %v418_v26 = vpop.permute.xlu0 %417  }
  0xbb   :  { %531 = vst.msk [vmem:[%s976_s1 + $0x18] sm:$0xff] %vm376_vm8, %v418_v26  }

// kernel: tile.13
= control target key start
LH: loop header
LB: loop body
LE: loop exit
PB: predicated region body
PF: predicated region fallthrough
CT: control target
= control target key end

     0   :  { %s40_s0 = inlined_call_operand.vmem [shape: f32[4], index: 0, kind: input, shape index: {}]   ;;  %s41_s1 = inlined_call_operand.vmem [shape: f32[32,4], index: 1, kind: output, shape index: {}]  }
   0x1   :  { %v4_v0 = vld [vmem:[%s40_s0] ss:$0 sm:$0xff] }
   0x2   :  { %5 = vst [vmem:[%s41_s1] sm:$0xff] %v4_v0  ;;  %12 = vst [vmem:[%s41_s1 + $0x8] sm:$0xff] %v4_v0 }
   0x3   :  { %13 = vst [vmem:[%s41_s1 + $0x10] sm:$0xff] %v4_v0  ;;  %14 = vst [vmem:[%s41_s1 + $0x18] sm:$0xff] %v4_v0 }

// kernel: tile.18
= control target key start
LH: loop header
LB: loop body
LE: loop exit
PB: predicated region body
PF: predicated region fallthrough
CT: control target
= control target key end

     0   :  { %s28_s0 = inlined_call_operand.vmem [shape: f32[8], index: 0, kind: input, shape index: {}]   ;;  %s29_s1 = inlined_call_operand.vmem [shape: f32[16,8], index: 1, kind: output, shape index: {}]  }
   0x1   :  { %v4_v0 = vld [vmem:[%s28_s0] ss:$0 sm:$0xff] }
   0x2   :  { %5 = vst [vmem:[%s29_s1] sm:$0xff] %v4_v0  ;;  %8 = vst [vmem:[%s29_s1 + $0x8] sm:$0xff] %v4_v0 }

// kernel: encoder_forward.1
= control target key start
LH: loop header
LB: loop body
LE: loop exit
PB: predicated region body
PF: predicated region fallthrough
CT: control target
= control target key end

     0   :  { %s2319_s24 = smov 1   ;;  %s2320_s25 = smov 19   ;;  %v2321_v8 = vmov 0.0   ;;  %s3087_s0 = inlined_call_operand.vmem [shape: f32[2,1,16,16], index: 0, kind: input, shape index: {}]   ;;  %s3088_s1 = inlined_call_operand.vmem [shape: f32[3,128,128], index: 1, kind: input, shape index: {}]   ;;  %s3089_s2 = inlined_call_operand.vmem [shape: f32[1,128], index: 2, kind: input, shape index: {}]   ;;  %s3090_s3 = inlined_call_operand.vmem [shape: f32[128,128], index: 3, kind: input, shape index: {}]   ;;  %s3091_s4 = inlined_call_operand.vmem [shape: f32[128,128], index: 4, kind: input, shape index: {}]   ;;  %s3092_s5 = inlined_call_operand.vmem [shape: f32[3,128,128], index: 5, kind: input, shape index: {}]   ;;  %s3093_s6 = inlined_call_operand.vmem [shape: f32[1,128], index: 6, kind: input, shape index: {}]   ;;  %s3094_s7 = inlined_call_operand.vmem [shape: f32[128,64], index: 7, kind: input, shape index: {}]   ;;  %s3095_s8 = inlined_call_operand.vmem [shape: f32[128,64], index: 8, kind: input, shape index: {}]   ;;  %s3096_s9 = inlined_call_operand.vmem [shape: f32[128,32], index: 9, kind: input, shape index: {}]   ;;  %s3097_s10 = inlined_call_operand.vmem [shape: f32[1,32], index: 10, kind: input, shape index: {}]   ;;  %s3098_s11 = inlined_call_operand.vmem [shape: f32[32,16], index: 11, kind: input, shape index: {}]   ;;  %s3099_s12 = inlined_call_operand.vmem [shape: f32[1,16], index: 12, kind: input, shape index: {}]   ;;  %s3100_s13 = inlined_call_operand.vmem [shape: f32[16,8], index: 13, kind: input, shape index: {}]   ;;  %s3101_s14 = inlined_call_operand.vmem [shape: f32[1,8], index: 14, kind: input, shape index: {}]   ;;  %s3102_s15 = inlined_call_operand.hbm [shape: f32[2,8], index: 15, kind: output, shape index: {}]  }
   0x1   :  { %v54_v0 = vld [vmem:[%s3087_s0] sm:$0xff]  ;;  %v1311_v1 = vld [vmem:[%s3087_s0 + $0x10] sm:$0xff]  ;;  %v55_v2 = vld [vmem:[%s3087_s0 + $0x8] sm:$0xff]  ;;  %51 = vst [vmem:[#allocation2] sm:$0xff] %v2321_v8 }
   0x2   :  { %58 = vrot.lane.b32.xlu0 %v54_v0, %s2319_s24  ;;  %72 = vrot.lane.b32.xlu1 %v1311_v1, %s2320_s25  ;;  %v1312_v3 = vld [vmem:[%s3087_s0 + $0x18] sm:$0xff]  ;;  %v1313_v4 = vld [vmem:[%s3088_s1 + $0x80] sm:$0xff]  ;;  %52 = vst [vmem:[#allocation2 + $0x8] sm:$0xff] %v2321_v8  ;;  %53 = vst [vmem:[#allocation2 + $0x10] sm:$0x3] %v2321_v8 }
   0x3   :  { %v1314_v5 = vld [vmem:[%s3088_s1 + $0x88] sm:$0xff]  ;;  %v1315_v6 = vld [vmem:[%s3088_s1 + $0x90] sm:$0xff]  ;;  %v1316_v7 = vld [vmem:[%s3088_s1 + $0x98] sm:$0xff]  ;;  %554 = vst [vmem:[#allocation4] sm:$0xff] %v2321_v8 }
   0x4   :  { %555 = vst [vmem:[#allocation4 + $0x8] sm:$0x3] %v2321_v8  ;;  %v1985_v9 = vpack.c.bf16 %v1314_v5, %v1313_v4  ;;  %v1989_v10 = vpack.c.bf16 %v1316_v7, %v1315_v6  ;;  %v1317_v11 = vld [vmem:[%s3088_s1 + $0xa0] sm:$0xff]  ;;  %v1318_v12 = vld [vmem:[%s3088_s1 + $0xa8] sm:$0xff]  ;;  %v1319_v14 = vld [vmem:[%s3088_s1 + $0xb0] sm:$0xff] }
   0x5   :  { %v1993_v13 = vpack.c.bf16 %v1318_v12, %v1317_v11  ;;  %v1320_v15 = vld [vmem:[%s3088_s1 + $0xb8] sm:$0xff] }
   0x6   :  { %60 = vrot.lane.b32.xlu0 %v55_v2, %s2319_s24  ;;  %74 = vrot.lane.b32.xlu1 %v1312_v3, %s2320_s25 }
   0x7   :  { %1986 = vmatprep.subr.bf16.mxu0 %v1985_v9 }
   0x8   :  { %1988 = vmatpush3.bf16.msra.mxu0 %v1985_v9 }
   0x9   :  { %1990 = vmatprep.subr.bf16.mxu0 %v1989_v10 }
   0xa   :  { %20 = vsyncpa [#allocation8], 0  ;;  %v1997_v16 = vpack.c.bf16 %v1320_v15, %v1319_v14  ;;  %v1321_v17 = vld [vmem:[%s3088_s1 + $0xc0] sm:$0xff]  ;;  %v1322_v18 = vld [vmem:[%s3088_s1 + $0xc8] sm:$0xff]  ;;  %v2322_v35 = vmov 0.0|0.0   ;;  %vm64_vm0 = vcmask 138248  }
   0xb   :  { %v2001_v19 = vpack.c.bf16 %v1322_v18, %v1321_v17  ;;  %v1323_v20 = vld [vmem:[%s3088_s1 + $0xd0] sm:$0xff]  ;;  %v1324_v21 = vld [vmem:[%s3088_s1 + $0xd8] sm:$0xff]  ;;  %v1325_v23 = vld [vmem:[%s3088_s1 + $0xe0] sm:$0xff]  ;;  %2081 = vmatprep.subr.bf16.mxu1 %v2322_v35  ;;  %vm78_vm1 = vcmask 285848   ;;  %vm2323_vm2 = vmmov 0   ;;  %vm1008_vm3 = vcmask 253952  }
   0xc   :  { %1992 = vmatpush3.bf16.msra.mxu0 %v1989_v10  ;;  %v2005_v22 = vpack.c.bf16 %v1324_v21, %v1323_v20  ;;  %v1326_v24 = vld [vmem:[%s3088_s1 + $0xe8] sm:$0xff]  ;;  %v1327_v26 = vld [vmem:[%s3088_s1 + $0xf0] sm:$0xff]  ;;  %v1328_v27 = vld [vmem:[%s3088_s1 + $0xf8] sm:$0xff]  ;;  %1719 = vmatprep.mubr.msk.f32.mxu1 %vm2323_vm2, %v2321_v8  ;;  %s2324_s28 = smov 32   ;;  %s2326_s25 = smov 64   ;;  %vm1018_vm4 = vcmask 517377  }
   0xd   :  { %1994 = vmatprep.subr.bf16.mxu0 %v1993_v13  ;;  %v2009_v25 = vpack.c.bf16 %v1326_v24, %v1325_v23  ;;  %v2013_v28 = vpack.c.bf16 %v1328_v27, %v1327_v26  ;;  %v83_v29 = vld [vmem:[%s3088_s1] sm:$0xff]  ;;  %v84_v30 = vld [vmem:[%s3088_s1 + $0x8] sm:$0xff]  ;;  %v383_v34 = vld [vmem:[%s3090_s3 + $0x10] sm:$0xff]  ;;  %vm1024_vm5 = vcmask 780802   ;;  %vm1027_vm6 = vcmask 1044227  }
   0xe   :  { %v2017_v31 = vpack.c.bf16 %v84_v30, %v83_v29  ;;  %v381_v32 = vld [vmem:[%s3090_s3] sm:$0xff]  ;;  %v382_v33 = vld [vmem:[%s3090_s3 + $0x8] sm:$0xff]  ;;  %v384_v37 = vld [vmem:[%s3090_s3 + $0x18] sm:$0xff]  ;;  %vm1136_vm7 = vcmask 261120   ;;  %vm1220_vm8 = vcmask 130048   ;;  %vm1295_vm9 = vcmask 58368  }
   0xf   :  { %v2082_v36 = vpack.c.bf16 %v382_v33, %v381_v32  ;;  %v2085_v38 = vpack.c.bf16 %v384_v37, %v383_v34  ;;  %v385_v39 = vld [vmem:[%s3090_s3 + $0x20] sm:$0xff]  ;;  %v386_v40 = vld [vmem:[%s3090_s3 + $0x28] sm:$0xff]  ;;  %v387_v42 = vld [vmem:[%s3090_s3 + $0x30] sm:$0xff] }
  0x10   :  { %1996 = vmatpush3.bf16.msra.mxu0 %v1993_v13  ;;  %v2088_v41 = vpack.c.bf16 %v386_v40, %v385_v39  ;;  %v388_v43 = vld [vmem:[%s3090_s3 + $0x38] sm:$0xff]  ;;  %v85_v50 = vld [vmem:[%s3088_s1 + $0x10] sm:$0xff]  ;;  %v87_v54 = vld [vmem:[%s3088_s1 + $0x20] sm:$0xff] }
  0x11   :  { %1998 = vmatprep.subr.bf16.mxu0 %v1997_v16  ;;  %2083 = vmatpush3.bf16.msra.mxu1 %v2082_v36  ;;  %v2091_v44 = vpack.c.bf16 %v388_v43, %v387_v42  ;;  %v86_v51 = vld [vmem:[%s3088_s1 + $0x18] sm:$0xff]  ;;  %v88_v55 = vld [vmem:[%s3088_s1 + $0x28] sm:$0xff]  ;;  %v89_v58 = vld [vmem:[%s3088_s1 + $0x30] sm:$0xff] }
  0x12   :  { %2084 = vmatprep.subr.bf16.mxu1 %v2322_v35  ;;  %v2021_v52 = vpack.c.bf16 %v86_v51, %v85_v50  ;;  %v2025_v57 = vpack.c.bf16 %v88_v55, %v87_v54  ;;  %v90_v59 = vld [vmem:[%s3088_s1 + $0x38] sm:$0xff]  ;;  %v91_v61 = vld [vmem:[%s3088_s1 + $0x40] sm:$0xff]  ;;  %v92_v62 = vld [vmem:[%s3088_s1 + $0x48] sm:$0xff] }
  0x13   :  { %v2029_v60 = vpack.c.bf16 %v90_v59, %v89_v58  ;;  %v2033_v63 = vpack.c.bf16 %v92_v62, %v91_v61  ;;  %v93_v0 = vld [vmem:[%s3088_s1 + $0x50] sm:$0xff]  ;;  %v94_v1 = vld [vmem:[%s3088_s1 + $0x58] sm:$0xff]  ;;  %v95_v3 = vld [vmem:[%s3088_s1 + $0x60] sm:$0xff] }
  0x14   :  { %2000 = vmatpush3.bf16.msra.mxu0 %v1997_v16  ;;  %v2037_v2 = vpack.c.bf16 %v94_v1, %v93_v0  ;;  %v96_v4 = vld [vmem:[%s3088_s1 + $0x68] sm:$0xff]  ;;  %v97_v6 = vld [vmem:[%s3088_s1 + $0x70] sm:$0xff]  ;;  %v98_v7 = vld [vmem:[%s3088_s1 + $0x78] sm:$0xff] }
  0x15   :  { %2002 = vmatprep.subr.bf16.mxu0 %v2001_v19  ;;  %2086 = vmatpush3.bf16.msra.mxu1 %v2085_v38  ;;  %v2041_v5 = vpack.c.bf16 %v96_v4, %v95_v3  ;;  %v2045_v9 = vpack.c.bf16 %v98_v7, %v97_v6  ;;  %v1329_v10 = vld [vmem:[%s3088_s1 + $0x100] sm:$0xff]  ;;  %v1330_v11 = vld [vmem:[%s3088_s1 + $0x108] sm:$0xff]  ;;  %v1331_v13 = vld [vmem:[%s3088_s1 + $0x110] sm:$0xff] }
  0x16   :  { %2087 = vmatprep.subr.bf16.mxu1 %v2322_v35  ;;  %v2049_v12 = vpack.c.bf16 %v1330_v11, %v1329_v10  ;;  %v1332_v14 = vld [vmem:[%s3088_s1 + $0x118] sm:$0xff]  ;;  %v1333_v17 = vld [vmem:[%s3088_s1 + $0x120] sm:$0xff]  ;;  %v1334_v18 = vld [vmem:[%s3088_s1 + $0x128] sm:$0xff] }
  0x17   :  { %v2053_v15 = vpack.c.bf16 %v1332_v14, %v1331_v13  ;;  %v2057_v20 = vpack.c.bf16 %v1334_v18, %v1333_v17  ;;  %v1335_v21 = vld [vmem:[%s3088_s1 + $0x130] sm:$0xff]  ;;  %v1337_v24 = vld [vmem:[%s3088_s1 + $0x140] sm:$0xff]  ;;  %v1344_v34 = vld [vmem:[%s3088_s1 + $0x178] sm:$0xff] }
  0x18   :  { %2004 = vmatpush3.bf16.msra.mxu0 %v2001_v19  ;;  %v1339_v27 = vld [vmem:[%s3088_s1 + $0x150] sm:$0xff]  ;;  %v1341_v30 = vld [vmem:[%s3088_s1 + $0x160] sm:$0xff]  ;;  %v390_v39 = vld [vmem:[%s3090_s3 + $0x48] sm:$0xff] }
  0x19   :  { %2006 = vmatprep.subr.bf16.mxu0 %v2005_v22  ;;  %2089 = vmatpush3.bf16.msra.mxu1 %v2088_v41  ;;  %v1343_v33 = vld [vmem:[%s3088_s1 + $0x170] sm:$0xff]  ;;  %v389_v38 = vld [vmem:[%s3090_s3 + $0x40] sm:$0xff]  ;;  %v392_v42 = vld [vmem:[%s3090_s3 + $0x58] sm:$0xff] }
  0x1a   :  { %2090 = vmatprep.subr.bf16.mxu1 %v2322_v35  ;;  %v2077_v36 = vpack.c.bf16 %v1344_v34, %v1343_v33  ;;  %v2094_v40 = vpack.c.bf16 %v390_v39, %v389_v38  ;;  %v391_v41 = vld [vmem:[%s3090_s3 + $0x50] sm:$0xff]  ;;  %v1345_v50 = vld [vmem:[%s3089_s2] ss:$0 sm:$0xff]  ;;  %v468_v58 = vld [vmem:[%s3091_s4 + $0x8] sm:$0xff] }
  0x1b   :  { %v2097_v43 = vpack.c.bf16 %v392_v42, %v391_v41  ;;  %v470_v0 = vld [vmem:[%s3091_s4 + $0x18] sm:$0xff]  ;;  %v472_v3 = vld [vmem:[%s3091_s4 + $0x28] sm:$0xff]  ;;  %v481_v18 = vld [vmem:[%s3091_s4 + $0x70] sm:$0xff] }
  0x1c   :  { %2008 = vmatpush3.bf16.msra.mxu0 %v2005_v22  ;;  %v1336_v22 = vld [vmem:[%s3088_s1 + $0x138] sm:$0xff]  ;;  %v476_v10 = vld [vmem:[%s3091_s4 + $0x48] sm:$0xff]  ;;  %v1350_v33 = vld [vmem:[%s3092_s5 + $0xa0] sm:$0xff] }
  0x1d   :  { %2010 = vmatprep.subr.bf16.mxu0 %v2009_v25  ;;  %2092 = vmatpush3.bf16.msra.mxu1 %v2091_v44  ;;  %v2061_v23 = vpack.c.bf16 %v1336_v22, %v1335_v21  ;;  %v393_v44 = vld [vmem:[%s3090_s3 + $0x60] sm:$0xff]  ;;  %v474_v6 = vld [vmem:[%s3091_s4 + $0x38] sm:$0xff]  ;;  %v1347_v22 = vld [vmem:[%s3092_s5 + $0x88] sm:$0xff] }
  0x1e   :  { %2093 = vmatprep.subr.bf16.mxu1 %v2322_v35  ;;  %v478_v13 = vld [vmem:[%s3091_s4 + $0x58] sm:$0xff]  ;;  %v1346_v21 = vld [vmem:[%s3092_s5 + $0x80] sm:$0xff]  ;;  %v1351_v34 = vld [vmem:[%s3092_s5 + $0xa8] sm:$0xff] }
  0x1f   :  { %v2136_v38 = vpack.c.bf16 %v1351_v34, %v1350_v33  ;;  %v1353_v41 = vld [vmem:[%s3092_s5 + $0xb8] sm:$0xff]  ;;  %v564_v42 = vld [vmem:[%s3092_s5 + $0x30] sm:$0xff] }
  0x20   :  { %2012 = vmatpush3.bf16.msra.mxu0 %v2009_v25  ;;  %v1338_v25 = vld [vmem:[%s3088_s1 + $0x148] sm:$0xff]  ;;  %v1376_v34 = vld [vmem:[%s3092_s5 + $0x170] sm:$0xff] }
  0x21   :  { %2014 = vmatprep.subr.bf16.mxu0 %v2013_v28  ;;  %v2065_v26 = vpack.c.bf16 %v1338_v25, %v1337_v24  ;;  %2095 = vmatpush3.bf16.msra.mxu1 %v2094_v40  ;;  %v558_v24 = vld [vmem:[%s3092_s5] sm:$0xff]  ;;  %v559_v25 = vld [vmem:[%s3092_s5 + $0x8] sm:$0xff]  ;;  %v1352_v40 = vld [vmem:[%s3092_s5 + $0xb0] sm:$0xff] }
  0x22   :  { %2096 = vmatprep.subr.bf16.mxu1 %v2322_v35 }
  0x24   :  { %2016 = vmatpush3.bf16.msra.mxu0 %v2013_v28  ;;  %v1340_v28 = vld [vmem:[%s3088_s1 + $0x158] sm:$0xff] }
  0x25   :  { %2018 = vmatprep.subr.bf16.mxu0 %v2017_v31  ;;  %v2069_v29 = vpack.c.bf16 %v1340_v28, %v1339_v27  ;;  %2098 = vmatpush3.bf16.msra.mxu1 %v2097_v43  ;;  %v2154_v27 = vpack.c.bf16 %v559_v25, %v558_v24  ;;  %v1349_v28 = vld [vmem:[%s3092_s5 + $0x98] sm:$0xff]  ;;  %v1370_v25 = vld [vmem:[%s3092_s5 + $0x140] sm:$0xff] }
  0x26   :  { %2099 = vmatprep.subr.bf16.mxu1 %v2322_v35  ;;  %v565_v43 = vld [vmem:[%s3092_s5 + $0x38] sm:$0xff] }
  0x74   :  { %v59_v45 = vpop.permute.xlu0 %58  ;;  %v73_v46 = vpop.permute.xlu1 %72 }
  0x75   :  { %65 = vst.msk [vmem:[#allocation2 + $0x1] sm:$0xff] %vm64_vm0, %v59_v45  ;;  %v394_v45 = vld [vmem:[%s3090_s3 + $0x68] sm:$0xff] }
  0x76   :  { %79 = vst.msk [vmem:[#allocation2 + $0x1] sm:$0xff] %vm78_vm1, %v73_v46  ;;  %v2100_v46 = vpack.c.bf16 %v394_v45, %v393_v44  ;;  %v2139_v44 = vpack.c.bf16 %v1353_v41, %v1352_v40  ;;  %v2163_v45 = vpack.c.bf16 %v565_v43, %v564_v42  ;;  %v836_v40 = vld [vmem:[%s3094_s7 + $0x8] sm:$0xff]  ;;  %v921_v41 = vld [vmem:[%s3095_s8] sm:$0xff] }
  0x77   :  { %v922_v43 = vld [vmem:[%s3095_s8 + $0x8] sm:$0xff] }
  0x78   :  { %v61_v47 = vpop.permute.xlu0 %60  ;;  %v75_v48 = vpop.permute.xlu1 %74  ;;  %2101 = vmatpush3.bf16.msra.mxu1 %v2100_v46  ;;  %v1354_v46 = vld [vmem:[%s3092_s5 + $0xc0] sm:$0xff] }
  0x79   :  { %66 = vst.msk [vmem:[#allocation2 + $0x9] sm:$0xff] %vm64_vm0, %v61_v47  ;;  %v395_v47 = vld [vmem:[%s3090_s3 + $0x70] sm:$0xff]  ;;  %2102 = vmatprep.subr.bf16.mxu1 %v2322_v35 }
  0x7a   :  { %80 = vst.msk [vmem:[#allocation2 + $0x9] sm:$0xff] %vm78_vm1, %v75_v48  ;;  %v396_v48 = vld [vmem:[%s3090_s3 + $0x78] sm:$0xff] }
  0x7d   :  { %v99_v49 = vld [vmem:[#allocation2 + $0x1] sm:$0xff] }
  0x7e   :  { %1614 = vmatprep.mubr.f32.mxu0 %v99_v49  ;;  %v81_v56 = vld [vmem:[#allocation2] sm:$0xff]  ;;  %v2103_v49 = vpack.c.bf16 %v396_v48, %v395_v47  ;;  %v1355_v47 = vld [vmem:[%s3092_s5 + $0xc8] sm:$0xff] }
  0x7f   :  { %v566_v48 = vld [vmem:[%s3092_s5 + $0x40] sm:$0xff] }
  0x80   :  { %2104 = vmatpush3.bf16.msra.mxu1 %v2103_v49  ;;  %v567_v49 = vld [vmem:[%s3092_s5 + $0x48] sm:$0xff] }
  0x81   :  { %v100_v53 = vld [vmem:[#allocation2 + $0x9] sm:$0xff]  ;;  %2105 = vmatprep.subr.bf16.mxu1 %v2322_v35 }
  0x82   :  { %1615 = vmatmul.mubr.f32.vlgmr.msra.gmra.mrb[0].mxu0 %v100_v53  ;;  %v82_v16 = vld [vmem:[#allocation2 + $0x8] sm:$0xff] }
  0x83   :  { %2020 = vmatpush3.bf16.msra.mxu0 %v2017_v31  ;;  %1649 = vmatprep.mubr.f32.mxu0 %v81_v56  ;;  %v268_v19 = vld [vmem:[#allocation2 + $0x2] sm:$0xff]  ;;  %v269_v37 = vld [vmem:[#allocation2 + $0xa] sm:$0xff] }
  0x84   :  { %2022 = vmatprep.subr.bf16.mxu0 %v2021_v52  ;;  %v1342_v31 = vld [vmem:[%s3088_s1 + $0x168] sm:$0xff] }
  0x85   :  { %v2073_v32 = vpack.c.bf16 %v1342_v31, %v1341_v30  ;;  %v561_v30 = vld [vmem:[%s3092_s5 + $0x18] sm:$0xff] }
  0x87   :  { %2024 = vmatpush3.bf16.msra.mxu0 %v2021_v52 }
  0x88   :  { %2026 = vmatprep.subr.bf16.mxu0 %v2025_v57 }
  0x8b   :  { %2028 = vmatpush3.bf16.msra.mxu0 %v2025_v57  ;;  %v467_v57 = vld [vmem:[%s3091_s4] sm:$0xff] }
  0x8c   :  { %2030 = vmatprep.subr.bf16.mxu0 %v2029_v60  ;;  %v2106_v61 = vpack.c.bf16 %v468_v58, %v467_v57  ;;  %v1360_v58 = vld [vmem:[%s3092_s5 + $0xf0] sm:$0xff] }
  0x8f   :  { %2032 = vmatpush3.bf16.msra.mxu0 %v2029_v60 }
  0x90   :  { %2034 = vmatprep.subr.bf16.mxu0 %v2033_v63 }
  0x93   :  { %2036 = vmatpush3.bf16.msra.mxu0 %v2033_v63  ;;  %v469_v63 = vld [vmem:[%s3091_s4 + $0x10] sm:$0xff] }
  0x94   :  { %2038 = vmatprep.subr.bf16.mxu0 %v2037_v2  ;;  %v2109_v1 = vpack.c.bf16 %v470_v0, %v469_v63  ;;  %v570_v0 = vld [vmem:[%s3092_s5 + $0x60] sm:$0xff] }
  0x97   :  { %2040 = vmatpush3.bf16.msra.mxu0 %v2037_v2  ;;  %v471_v2 = vld [vmem:[%s3091_s4 + $0x20] sm:$0xff] }
  0x98   :  { %2042 = vmatprep.subr.bf16.mxu0 %v2041_v5  ;;  %v2112_v4 = vpack.c.bf16 %v472_v3, %v471_v2  ;;  %v572_v3 = vld [vmem:[%s3092_s5 + $0x70] sm:$0xff] }
  0x9b   :  { %2044 = vmatpush3.bf16.msra.mxu0 %v2041_v5  ;;  %v473_v5 = vld [vmem:[%s3091_s4 + $0x30] sm:$0xff] }
  0x9c   :  { %2046 = vmatprep.subr.bf16.mxu0 %v2045_v9  ;;  %v2115_v7 = vpack.c.bf16 %v474_v6, %v473_v5 }
  0x9f   :  { %2048 = vmatpush3.bf16.msra.mxu0 %v2045_v9  ;;  %v475_v9 = vld [vmem:[%s3091_s4 + $0x40] sm:$0xff] }
  0xa0   :  { %2050 = vmatprep.subr.bf16.mxu0 %v2049_v12  ;;  %v2118_v11 = vpack.c.bf16 %v476_v10, %v475_v9  ;;  %v1362_v9 = vld [vmem:[%s3092_s5 + $0x100] sm:$0xff]  ;;  %v1363_v10 = vld [vmem:[%s3092_s5 + $0x108] sm:$0xff] }
  0xa2   :  { %1650 = vmatmul.mubr.f32.vlgmr.msra.gmra.mrb[0].mxu0 %v82_v16  ;;  %v480_v16 = vld [vmem:[%s3091_s4 + $0x68] sm:$0xff] }
  0xa3   :  { %2052 = vmatpush3.bf16.msra.mxu0 %v2049_v12  ;;  %1684 = vmatprep.mubr.f32.mxu0 %v268_v19  ;;  %v477_v12 = vld [vmem:[%s3091_s4 + $0x50] sm:$0xff]  ;;  %v482_v19 = vld [vmem:[%s3091_s4 + $0x78] sm:$0xff] }
  0xa4   :  { %2054 = vmatprep.subr.bf16.mxu0 %v2053_v15  ;;  %v2121_v14 = vpack.c.bf16 %v478_v13, %v477_v12  ;;  %v2178_v12 = vpack.c.bf16 %v1363_v10, %v1362_v9  ;;  %v932_v10 = vld [vmem:[%s3095_s8 + $0x58] sm:$0xff] }
  0xa7   :  { %2056 = vmatpush3.bf16.msra.mxu0 %v2053_v15  ;;  %v479_v15 = vld [vmem:[%s3091_s4 + $0x60] sm:$0xff]  ;;  %s2325_s4 = smov 96  }
  0xa8   :  { %2058 = vmatprep.subr.bf16.mxu0 %v2057_v20  ;;  %v2124_v17 = vpack.c.bf16 %v480_v16, %v479_v15  ;;  %v1364_v15 = vld [vmem:[%s3092_s5 + $0x110] sm:$0xff]  ;;  %v1365_v16 = vld [vmem:[%s3092_s5 + $0x118] sm:$0xff] }
  0xab   :  { %2060 = vmatpush3.bf16.msra.mxu0 %v2057_v20  ;;  %v2127_v20 = vpack.c.bf16 %v482_v19, %v481_v18  ;;  %v1366_v18 = vld [vmem:[%s3092_s5 + $0x120] sm:$0xff]  ;;  %v1367_v19 = vld [vmem:[%s3092_s5 + $0x128] sm:$0xff] }
  0xac   :  { %2062 = vmatprep.subr.bf16.mxu0 %v2061_v23 }
  0xaf   :  { %2064 = vmatpush3.bf16.msra.mxu0 %v2061_v23  ;;  %v2130_v23 = vpack.c.bf16 %v1347_v22, %v1346_v21  ;;  %v1368_v21 = vld [vmem:[%s3092_s5 + $0x130] sm:$0xff]  ;;  %v1369_v22 = vld [vmem:[%s3092_s5 + $0x138] sm:$0xff] }
  0xb0   :  { %2066 = vmatprep.subr.bf16.mxu0 %v2065_v26  ;;  %v2187_v24 = vpack.c.bf16 %v1369_v22, %v1368_v21  ;;  %v936_v21 = vld [vmem:[%s3095_s8 + $0x78] sm:$0xff] }
  0xb3   :  { %2068 = vmatpush3.bf16.msra.mxu0 %v2065_v26  ;;  %v1348_v26 = vld [vmem:[%s3092_s5 + $0x90] sm:$0xff] }
  0xb4   :  { %2070 = vmatprep.subr.bf16.mxu0 %v2069_v29  ;;  %v2133_v31 = vpack.c.bf16 %v1349_v28, %v1348_v26  ;;  %v1371_v26 = vld [vmem:[%s3092_s5 + $0x148] sm:$0xff]  ;;  %v1372_v28 = vld [vmem:[%s3092_s5 + $0x150] sm:$0xff] }
  0xb7   :  { %2072 = vmatpush3.bf16.msra.mxu0 %v2069_v29  ;;  %v560_v29 = vld [vmem:[%s3092_s5 + $0x10] sm:$0xff] }
  0xb8   :  { %2074 = vmatprep.subr.bf16.mxu0 %v2073_v32 }
  0xbb   :  { %2076 = vmatpush3.bf16.msra.mxu0 %v2073_v32  ;;  %v2157_v32 = vpack.c.bf16 %v561_v30, %v560_v29  ;;  %v1373_v29 = vld [vmem:[%s3092_s5 + $0x158] sm:$0xff] }
  0xbc   :  { %2078 = vmatprep.subr.bf16.mxu0 %v2077_v36  ;;  %v2193_v30 = vpack.c.bf16 %v1373_v29, %v1372_v28 }
  0xbf   :  { %2080 = vmatpush3.bf16.msra.mxu0 %v2077_v36  ;;  %v562_v36 = vld [vmem:[%s3092_s5 + $0x20] sm:$0xff] }
  0xc0   :  { %2153 = vmatprep.subr.bf16.mxu0 %v2322_v35 }
  0xc2   :  { %1685 = vmatmul.mubr.f32.vlgmr.msra.gmra.mrb[0].mxu0 %v269_v37  ;;  %v563_v37 = vld [vmem:[%s3092_s5 + $0x28] sm:$0xff] }
  0xc3   :  { %1824 = vmatprep.mubr.msk.f32.mxu0 %vm2323_vm2, %v2321_v8  ;;  %2155 = vmatpush3.bf16.msra.mxu0 %v2154_v27  ;;  %v2160_v39 = vpack.c.bf16 %v563_v37, %v562_v36  ;;  %v2190_v27 = vpack.c.bf16 %v1371_v26, %v1370_v25  ;;  %v1377_v36 = vld [vmem:[%s3092_s5 + $0x178] sm:$0xff] }
  0xc4   :  { %2156 = vmatprep.subr.bf16.mxu0 %v2322_v35  ;;  %v2199_v37 = vpack.c.bf16 %v1377_v36, %v1376_v34 }
  0xc7   :  { %2158 = vmatpush3.bf16.msra.mxu0 %v2157_v32  ;;  %v1375_v32 = vld [vmem:[%s3092_s5 + $0x168] sm:$0xff] }
  0xc8   :  { %2159 = vmatprep.subr.bf16.mxu0 %v2322_v35 }
  0xcb   :  { %2161 = vmatpush3.bf16.msra.mxu0 %v2160_v39  ;;  %v835_v39 = vld [vmem:[%s3094_s7] sm:$0xff] }
  0xcc   :  { %2162 = vmatprep.subr.bf16.mxu0 %v2322_v35  ;;  %v2202_v42 = vpack.c.bf16 %v836_v40, %v835_v39  ;;  %v1031_v39 = vld [vmem:[%s3096_s9] sm:$0xff]  ;;  %v1032_v40 = vld [vmem:[%s3096_s9 + $0x8] sm:$0xff] }
  0xcf   :  { %2164 = vmatpush3.bf16.msra.mxu0 %v2163_v45  ;;  %v838_v45 = vld [vmem:[%s3094_s7 + $0x18] sm:$0xff] }
  0xd0   :  { %2165 = vmatprep.subr.bf16.mxu0 %v2322_v35 }
 0x195   :  { %v1686_v51 = vpop.f32.mrb[0].mxu0 }
 0x196   :  { %v372_v52 = vadd.f32 %v1686_v51, %v1345_v50  ;;  %v353_v53 = vpop.f32.mrb[1].mxu0  ;;  %v2166_v51 = vpack.c.bf16 %v567_v49, %v566_v48  ;;  %v924_v48 = vld [vmem:[%s3095_s8 + $0x18] sm:$0xff] }
 0x197   :  { %v371_v54 = vadd.f32 %v1345_v50, %v353_v53  ;;  %v2142_v50 = vpack.c.bf16 %v1355_v47, %v1354_v46  ;;  %v1357_v53 = vld [vmem:[%s3092_s5 + $0xd8] sm:$0xff]  ;;  %v2226_v46 = vpack.c.bf16 %v922_v43, %v921_v41  ;;  %v923_v47 = vld [vmem:[%s3095_s8 + $0x10] sm:$0xff] }
 0x198   :  { %v374_v55 = vmax.f32 %v372_v52, 0.0  ;;  %v1356_v52 = vld [vmem:[%s3092_s5 + $0xd0] sm:$0xff]  ;;  %2167 = vmatpush3.bf16.msra.mxu0 %v2166_v51  ;;  %v839_v51 = vld [vmem:[%s3094_s7 + $0x20] sm:$0xff]  ;;  %v1034_v43 = vld [vmem:[%s3096_s9 + $0x18] sm:$0xff] }
 0x199   :  { %v373_v56 = vmax.f32 %v371_v54, 0.0  ;;  %v2145_v54 = vpack.c.bf16 %v1357_v53, %v1356_v52  ;;  %2168 = vmatprep.subr.bf16.mxu0 %v2322_v35  ;;  %v840_v52 = vld [vmem:[%s3094_s7 + $0x28] sm:$0xff]  ;;  %v925_v53 = vld [vmem:[%s3095_s8 + $0x20] sm:$0xff]  ;;  %v1033_v41 = vld [vmem:[%s3096_s9 + $0x10] sm:$0xff] }
 0x19a   :  { %376 = vst [vmem:[#allocation3 + $0x8] sm:$0xff] %v374_v55  ;;  %v1358_v55 = vld [vmem:[%s3092_s5 + $0xe0] sm:$0xff] }
 0x19b   :  { %375 = vst [vmem:[#allocation3] sm:$0xff] %v373_v56  ;;  %v1359_v56 = vld [vmem:[%s3092_s5 + $0xe8] sm:$0xff] }
 0x19c   :  { %v2148_v57 = vpack.c.bf16 %v1359_v56, %v1358_v55  ;;  %v2208_v55 = vpack.c.bf16 %v840_v52, %v839_v51  ;;  %v1039_v51 = vld [vmem:[%s3096_s9 + $0x40] sm:$0xff]  ;;  %v1040_v52 = vld [vmem:[%s3096_s9 + $0x48] sm:$0xff] }
 0x1a2   :  { %v377_v59 = vld [vmem:[#allocation3] ss:$2 sm:$0xff]  ;;  %v379_v60 = vld [vmem:[#allocation3 + $0x1] ss:$2 sm:$0xff] }
 0x1a3   :  { %v380_v62 = vmax.f32 %v377_v59, %v379_v60  ;;  %v1361_v59 = vld [vmem:[%s3092_s5 + $0xf8] sm:$0xff]  ;;  %v568_v60 = vld [vmem:[%s3092_s5 + $0x50] sm:$0xff] }
 0x1a5   :  { %1720 = vmatmul.mubr.f32.vlgmr.msra.gmra.mrb[0].mxu1 %v380_v62 }
 0x1a6   :  { %2107 = vmatpush3.bf16.msra.mxu1 %v2106_v61  ;;  %1754 = vmatprep.mubr.msk.f32.mxu1 %vm2323_vm2, %v2321_v8  ;;  %v569_v61 = vld [vmem:[%s3092_s5 + $0x58] sm:$0xff] }
 0x1a7   :  { %2108 = vmatprep.subr.bf16.mxu1 %v2322_v35  ;;  %v2169_v63 = vpack.c.bf16 %v569_v61, %v568_v60  ;;  %v928_v60 = vld [vmem:[%s3095_s8 + $0x38] sm:$0xff] }
 0x1a9   :  { %2170 = vmatpush3.bf16.msra.mxu0 %v2169_v63  ;;  %v843_v63 = vld [vmem:[%s3094_s7 + $0x40] sm:$0xff] }
 0x1aa   :  { %2110 = vmatpush3.bf16.msra.mxu1 %v2109_v1  ;;  %2171 = vmatprep.subr.bf16.mxu0 %v2322_v35  ;;  %v571_v1 = vld [vmem:[%s3092_s5 + $0x68] sm:$0xff] }
 0x1ab   :  { %2111 = vmatprep.subr.bf16.mxu1 %v2322_v35  ;;  %v2172_v2 = vpack.c.bf16 %v571_v1, %v570_v0  ;;  %v844_v0 = vld [vmem:[%s3094_s7 + $0x48] sm:$0xff]  ;;  %v929_v1 = vld [vmem:[%s3095_s8 + $0x40] sm:$0xff] }
 0x1ad   :  { %2173 = vmatpush3.bf16.msra.mxu0 %v2172_v2  ;;  %v2214_v2 = vpack.c.bf16 %v844_v0, %v843_v63 }
 0x1ae   :  { %2113 = vmatpush3.bf16.msra.mxu1 %v2112_v4  ;;  %v573_v4 = vld [vmem:[%s3092_s5 + $0x78] sm:$0xff]  ;;  %2174 = vmatprep.subr.bf16.mxu0 %v2322_v35 }
 0x1af   :  { %2114 = vmatprep.subr.bf16.mxu1 %v2322_v35  ;;  %v2175_v5 = vpack.c.bf16 %v573_v4, %v572_v3  ;;  %v930_v3 = vld [vmem:[%s3095_s8 + $0x48] sm:$0xff] }
 0x1b0   :  { %v2238_v4 = vpack.c.bf16 %v930_v3, %v929_v1 }
 0x1b1   :  { %2176 = vmatpush3.bf16.msra.mxu0 %v2175_v5  ;;  %v845_v5 = vld [vmem:[%s3094_s7 + $0x50] sm:$0xff] }
 0x1b2   :  { %2116 = vmatpush3.bf16.msra.mxu1 %v2115_v7  ;;  %2201 = vmatprep.subr.bf16.mxu0 %v2322_v35 }
 0x1b3   :  { %2117 = vmatprep.subr.bf16.mxu1 %v2322_v35 }
 0x1b6   :  { %2119 = vmatpush3.bf16.msra.mxu1 %v2118_v11 }
 0x1b7   :  { %2120 = vmatprep.subr.bf16.mxu1 %v2322_v35 }
 0x1ba   :  { %2122 = vmatpush3.bf16.msra.mxu1 %v2121_v14 }
 0x1bb   :  { %2123 = vmatprep.subr.bf16.mxu1 %v2322_v35 }
 0x1be   :  { %2125 = vmatpush3.bf16.msra.mxu1 %v2124_v17  ;;  %v2181_v17 = vpack.c.bf16 %v1365_v16, %v1364_v15  ;;  %v934_v16 = vld [vmem:[%s3095_s8 + $0x68] sm:$0xff] }
 0x1bf   :  { %2126 = vmatprep.subr.bf16.mxu1 %v2322_v35 }
 0x1c2   :  { %2128 = vmatpush3.bf16.msra.mxu1 %v2127_v20  ;;  %v2184_v20 = vpack.c.bf16 %v1367_v19, %v1366_v18  ;;  %v850_v18 = vld [vmem:[%s3094_s7 + $0x78] sm:$0xff] }
 0x1c3   :  { %2129 = vmatprep.subr.bf16.mxu1 %v2322_v35 }
 0x1c5   :  { %1755 = vmatmul.mubr.f32.vlgmr.msra.gmra.mrb[2].mxu1 %v380_v62  ;;  %v2151_v62 = vpack.c.bf16 %v1361_v59, %v1360_v58  ;;  %v842_v58 = vld [vmem:[%s3094_s7 + $0x38] sm:$0xff]  ;;  %v927_v59 = vld [vmem:[%s3095_s8 + $0x30] sm:$0xff] }
 0x1c6   :  { %1789 = vmatprep.mubr.msk.f32.mxu1 %vm2323_vm2, %v2321_v8  ;;  %2131 = vmatpush3.bf16.msra.mxu1 %v2130_v23 }
 0x1c7   :  { %2132 = vmatprep.subr.bf16.mxu1 %v2322_v35 }
 0x1ca   :  { %2134 = vmatpush3.bf16.msra.mxu1 %v2133_v31  ;;  %v1374_v31 = vld [vmem:[%s3092_s5 + $0x160] sm:$0xff] }
 0x1cb   :  { %2135 = vmatprep.subr.bf16.mxu1 %v2322_v35  ;;  %v2196_v33 = vpack.c.bf16 %v1375_v32, %v1374_v31 }
 0x1ce   :  { %2137 = vmatpush3.bf16.msra.mxu1 %v2136_v38 }
 0x1cf   :  { %2138 = vmatprep.subr.bf16.mxu1 %v2322_v35 }
 0x1d2   :  { %2140 = vmatpush3.bf16.msra.mxu1 %v2139_v44  ;;  %v837_v44 = vld [vmem:[%s3094_s7 + $0x10] sm:$0xff] }
 0x1d3   :  { %2141 = vmatprep.subr.bf16.mxu1 %v2322_v35  ;;  %v2205_v49 = vpack.c.bf16 %v838_v45, %v837_v44  ;;  %v2253_v44 = vpack.c.bf16 %v1034_v43, %v1033_v41  ;;  %v1035_v45 = vld [vmem:[%s3096_s9 + $0x20] sm:$0xff] }
 0x1d6   :  { %2143 = vmatpush3.bf16.msra.mxu1 %v2142_v50  ;;  %v2229_v50 = vpack.c.bf16 %v924_v48, %v923_v47  ;;  %v1037_v48 = vld [vmem:[%s3096_s9 + $0x30] sm:$0xff] }
 0x1d7   :  { %2144 = vmatprep.subr.bf16.mxu1 %v2322_v35 }
 0x1da   :  { %2146 = vmatpush3.bf16.msra.mxu1 %v2145_v54  ;;  %v926_v54 = vld [vmem:[%s3095_s8 + $0x28] sm:$0xff] }
 0x1db   :  { %2147 = vmatprep.subr.bf16.mxu1 %v2322_v35  ;;  %v2232_v56 = vpack.c.bf16 %v926_v54, %v925_v53  ;;  %v2262_v53 = vpack.c.bf16 %v1040_v52, %v1039_v51  ;;  %v1041_v54 = vld [vmem:[%s3096_s9 + $0x50] sm:$0xff] }
 0x1de   :  { %2149 = vmatpush3.bf16.msra.mxu1 %v2148_v57  ;;  %v841_v57 = vld [vmem:[%s3094_s7 + $0x30] sm:$0xff] }
 0x1df   :  { %2150 = vmatprep.subr.bf16.mxu1 %v2322_v35  ;;  %v2211_v61 = vpack.c.bf16 %v842_v58, %v841_v57  ;;  %v1043_v57 = vld [vmem:[%s3096_s9 + $0x60] sm:$0xff]  ;;  %v1044_v58 = vld [vmem:[%s3096_s9 + $0x68] sm:$0xff] }
 0x1e2   :  { %2152 = vmatpush3.bf16.msra.mxu1 %v2151_v62  ;;  %v2235_v62 = vpack.c.bf16 %v928_v60, %v927_v59  ;;  %v2268_v59 = vpack.c.bf16 %v1044_v58, %v1043_v57  ;;  %v1045_v60 = vld [vmem:[%s3096_s9 + $0x70] sm:$0xff] }
 0x1e3   :  { %2177 = vmatprep.subr.bf16.mxu1 %v2322_v35 }
 0x278   :  { %v463_v6 = vpop.f32.mrb[0].mxu1 }
 0x279   :  { %v1721_v7 = vpop.f32.mrb[1].mxu1 }
 0x27a   :  { %v931_v7 = vld [vmem:[%s3095_s8 + $0x50] sm:$0xff] }
 0x298   :  { %v549_v11 = vpop.f32.mrb[2].mxu1 }
 0x299   :  { %v553_v13 = vmax.f32 %v463_v6, %v549_v11  ;;  %v1756_v14 = vpop.f32.mrb[3].mxu1  ;;  %v846_v6 = vld [vmem:[%s3094_s7 + $0x58] sm:$0xff]  ;;  %v2241_v11 = vpack.c.bf16 %v932_v10, %v931_v7 }
 0x29a   :  { %v2217_v9 = vpack.c.bf16 %v846_v6, %v845_v5  ;;  %v933_v14 = vld [vmem:[%s3095_s8 + $0x60] sm:$0xff]  ;;  %v1126_v5 = vld [vmem:[%s3098_s11 + $0x8] sm:$0xff] }
 0x29b   :  { %556 = vst [vmem:[#allocation4 + $0x1] sm:$0xff] %v553_v13  ;;  %1790 = vmatmul.mubr.f32.vlgmr.msra.gmra.mrb[4].mxu1 %v553_v13  ;;  %v848_v13 = vld [vmem:[%s3094_s7 + $0x68] sm:$0xff]  ;;  %v2244_v19 = vpack.c.bf16 %v934_v16, %v933_v14 }
 0x29c   :  { %2179 = vmatpush3.bf16.msra.mxu1 %v2178_v12  ;;  %1859 = vmatprep.mubr.msk.f32.mxu1 %vm2323_vm2, %v2321_v8  ;;  %v847_v12 = vld [vmem:[%s3094_s7 + $0x60] sm:$0xff] }
 0x29d   :  { %2180 = vmatprep.subr.bf16.mxu1 %v2322_v35  ;;  %v2220_v15 = vpack.c.bf16 %v848_v13, %v847_v12  ;;  %v1127_v12 = vld [vmem:[%s3098_s11 + $0x10] sm:$0xff]  ;;  %v1128_v13 = vld [vmem:[%s3098_s11 + $0x18] sm:$0xff] }
 0x29e   :  { %v2277_v14 = vpack.c.bf16 %v1128_v13, %v1127_v12 }
 0x2a0   :  { %2182 = vmatpush3.bf16.msra.mxu1 %v2181_v17  ;;  %v849_v17 = vld [vmem:[%s3094_s7 + $0x70] sm:$0xff] }
 0x2a1   :  { %2183 = vmatprep.subr.bf16.mxu1 %v2322_v35  ;;  %v2223_v22 = vpack.c.bf16 %v850_v18, %v849_v17 }
 0x2a2   :  { %v557_v23 = vld [vmem:[#allocation4] sm:$0xff] }
 0x2a3   :  { %1825 = vmatmul.mubr.f32.vlgmr.msra.gmra.mrb[2].mxu0 %v557_v23  ;;  %v732_v38 = vld [vmem:[#allocation4 + $0x2] sm:$0xff] }
 0x2a4   :  { %2185 = vmatpush3.bf16.msra.mxu1 %v2184_v20  ;;  %1894 = vmatprep.mubr.msk.f32.mxu0 %vm2323_vm2, %v2321_v8  ;;  %v935_v20 = vld [vmem:[%s3095_s8 + $0x70] sm:$0xff] }
 0x2a5   :  { %2186 = vmatprep.subr.bf16.mxu1 %v2322_v35  ;;  %2203 = vmatpush3.bf16.msra.mxu0 %v2202_v42  ;;  %v2247_v23 = vpack.c.bf16 %v936_v21, %v935_v20  ;;  %v2250_v42 = vpack.c.bf16 %v1032_v40, %v1031_v39  ;;  %v1211_v20 = vld [vmem:[%s3100_s13] sm:$0xff] }
 0x2a6   :  { %2204 = vmatprep.subr.bf16.mxu0 %v2322_v35 }
 0x2a8   :  { %2188 = vmatpush3.bf16.msra.mxu1 %v2187_v24 }
 0x2a9   :  { %2189 = vmatprep.subr.bf16.mxu1 %v2322_v35  ;;  %2206 = vmatpush3.bf16.msra.mxu0 %v2205_v49  ;;  %v1038_v49 = vld [vmem:[%s3096_s9 + $0x38] sm:$0xff] }
 0x2aa   :  { %2207 = vmatprep.subr.bf16.mxu0 %v2322_v35 }
 0x2ac   :  { %2191 = vmatpush3.bf16.msra.mxu1 %v2190_v27 }
 0x2ad   :  { %2192 = vmatprep.subr.bf16.mxu1 %v2322_v35  ;;  %2209 = vmatpush3.bf16.msra.mxu0 %v2208_v55  ;;  %v1042_v55 = vld [vmem:[%s3096_s9 + $0x58] sm:$0xff] }
 0x2ae   :  { %2210 = vmatprep.subr.bf16.mxu0 %v2322_v35 }
 0x2b0   :  { %2194 = vmatpush3.bf16.msra.mxu1 %v2193_v30  ;;  %v1378_v30 = vld [vmem:[%s3093_s6] ss:$0 sm:$0xff]  ;;  %s2327_s6 = smov [#allocation7]  }
 0x2b1   :  { %2195 = vmatprep.subr.bf16.mxu1 %v2322_v35  ;;  %2212 = vmatpush3.bf16.msra.mxu0 %v2211_v61  ;;  %v1046_v61 = vld [vmem:[%s3096_s9 + $0x78] sm:$0xff]  ;;  %s1303_s22 = sshll.u32 %s2327_s6, 4  ;;  %s1304_s22 = int_to_ptr.vmem [resolvable:$true] %s1303_s22 }
 0x2b2   :  { %2213 = vmatprep.subr.bf16.mxu0 %v2322_v35  ;;  %p2300_p1 = scmp.lt.s32.totalorder %s1304_s22, %s1304_s22 }
 0x2b4   :  { %2197 = vmatpush3.bf16.msra.mxu1 %v2196_v33 }
 0x2b5   :  { %2198 = vmatprep.subr.bf16.mxu1 %v2322_v35  ;;  %2215 = vmatpush3.bf16.msra.mxu0 %v2214_v2 }
 0x2b6   :  { %2216 = vmatprep.subr.bf16.mxu0 %v2322_v35 }
 0x2b8   :  { %2200 = vmatpush3.bf16.msra.mxu1 %v2199_v37 }
 0x2b9   :  { %2225 = vmatprep.subr.bf16.mxu1 %v2322_v35  ;;  %2218 = vmatpush3.bf16.msra.mxu0 %v2217_v9 }
 0x2ba   :  { %2219 = vmatprep.subr.bf16.mxu0 %v2322_v35 }
 0x2bb   :  { %1860 = vmatmul.mubr.f32.vlgmr.msra.gmra.mrb[6].mxu1 %v732_v38 }
 0x2bc   :  { %1929 = vmatprep.mubr.msk.f32.mxu1 %vm2323_vm2, %v2321_v8  ;;  %2227 = vmatpush3.bf16.msra.mxu1 %v2226_v46  ;;  %v1036_v46 = vld [vmem:[%s3096_s9 + $0x28] sm:$0xff] }
 0x2bd   :  { %2228 = vmatprep.subr.bf16.mxu1 %v2322_v35  ;;  %2221 = vmatpush3.bf16.msra.mxu0 %v2220_v15  ;;  %v2256_v47 = vpack.c.bf16 %v1036_v46, %v1035_v45  ;;  %v1379_v15 = vld [vmem:[%s3097_s10] ss:$0 sm:$0xff] }
 0x2be   :  { %2222 = vmatprep.subr.bf16.mxu0 %v2322_v35 }
 0x2c0   :  { %2230 = vmatpush3.bf16.msra.mxu1 %v2229_v50  ;;  %v2259_v50 = vpack.c.bf16 %v1038_v49, %v1037_v48 }
 0x2c1   :  { %2231 = vmatprep.subr.bf16.mxu1 %v2322_v35  ;;  %2224 = vmatpush3.bf16.msra.mxu0 %v2223_v22  ;;  %v1380_v22 = vld [vmem:[%s3099_s12] ss:$0 sm:$0xff]  ;;  %s2295_s12 = scalar_lea.vmem %s1304_s22, 32 }
 0x2c2   :  { %2249 = vmatprep.subr.bf16.mxu0 %v2322_v35  ;;  %p2296_p0 = scmp.ne.s32.totalorder %s1304_s22, %s2295_s12  ;;  %p2301_p2 = scmp.lt.s32.totalorder %s2295_s12, %s2295_s12 }
 0x2c4   :  { %2233 = vmatpush3.bf16.msra.mxu1 %v2232_v56  ;;  %v2265_v56 = vpack.c.bf16 %v1042_v55, %v1041_v54  ;;  %p2302_p3 = por %p2301_p2, %p2300_p1 }
 0x2c5   :  { %2234 = vmatprep.subr.bf16.mxu1 %v2322_v35 }
 0x2c6   :  { %p2303_p4 = pnand %p2302_p3, %p2296_p0 }
 0x2c8   :  { %2236 = vmatpush3.bf16.msra.mxu1 %v2235_v62  ;;  %v2271_v62 = vpack.c.bf16 %v1046_v61, %v1045_v60 }
 0x2c9   :  { %2237 = vmatprep.subr.bf16.mxu1 %v2322_v35 }
 0x2cc   :  { %2239 = vmatpush3.bf16.msra.mxu1 %v2238_v4  ;;  %v1125_v4 = vld [vmem:[%s3098_s11] sm:$0xff] }
 0x2cd   :  { %2240 = vmatprep.subr.bf16.mxu1 %v2322_v35  ;;  %v2274_v6 = vpack.c.bf16 %v1126_v5, %v1125_v4 }
 0x2d0   :  { %2242 = vmatpush3.bf16.msra.mxu1 %v2241_v11 }
 0x2d1   :  { %2243 = vmatprep.subr.bf16.mxu1 %v2322_v35 }
 0x2d4   :  { %2245 = vmatpush3.bf16.msra.mxu1 %v2244_v19 }
 0x2d5   :  { %2246 = vmatprep.subr.bf16.mxu1 %v2322_v35 }
 0x2d8   :  { %2248 = vmatpush3.bf16.msra.mxu1 %v2247_v23 }
 0x2d9   :  { %2273 = vmatprep.subr.bf16.mxu1 %v2322_v35 }
 0x36e   :  { %v658_v24 = vpop.f32.mrb[4].mxu1 }
 0x36f   :  { %v1791_v25 = vpop.f32.mrb[5].mxu1 }
 0x376   :  { %v728_v26 = vpop.f32.mrb[2].mxu0 }
 0x377   :  { %v729_v27 = vadd.f32 %v728_v26, %v658_v24  ;;  %v1826_v28 = vpop.f32.mrb[3].mxu0 }
 0x38e   :  { %v816_v29 = vpop.f32.mrb[6].mxu1 }
 0x38f   :  { %v820_v31 = vadd.f32 %v816_v29, %v729_v27  ;;  %v1861_v32 = vpop.f32.mrb[7].mxu1 }
 0x391   :  { %v828_v33 = vadd.f32 %v1378_v30, %v820_v31 }
 0x393   :  { %v829_v34 = vmax.f32 %v828_v33, 0.0 }
 0x395   :  { %830 = vst [vmem:[#allocation5] sm:$0xff] %v829_v34 }
 0x39c   :  { %v831_v36 = vld [vmem:[#allocation5] ss:$2 sm:$0xf]  ;;  %v833_v37 = vld [vmem:[#allocation5 + $0x1] ss:$2 sm:$0xf] }
 0x39d   :  { %v834_v38 = vmax.f32 %v831_v36, %v833_v37 }
 0x39f   :  { %1895 = vmatmul.mubr.f32.vlgmr.msra.gmra.mrb[4].mxu0 %v834_v38  ;;  %1930 = vmatmul.mubr.f32.vlgmr.msra.gmra.mrb[8].mxu1 %v834_v38 }
 0x3a0   :  { %1964 = vmatprep.mubr.msk.f32.mxu0 %vm2323_vm2, %v2321_v8  ;;  %1975 = vmatprep.mubr.msk.f32.mxu1 %vm2323_vm2, %v2321_v8 }
 0x3a1   :  { %2251 = vmatpush3.bf16.msra.mxu0 %v2250_v42  ;;  %2275 = vmatpush3.bf16.msra.mxu1 %v2274_v6 }
 0x3a2   :  { %2252 = vmatprep.subr.bf16.mxu0 %v2322_v35  ;;  %2276 = vmatprep.subr.bf16.mxu1 %v2322_v35 }
 0x3a5   :  { %2254 = vmatpush3.bf16.msra.mxu0 %v2253_v44  ;;  %2278 = vmatpush3.bf16.msra.mxu1 %v2277_v14 }
 0x3a6   :  { %2255 = vmatprep.subr.bf16.mxu0 %v2322_v35  ;;  %2279 = vmatprep.subr.bf16.mxu1 %v2322_v35 }
 0x3a9   :  { %2257 = vmatpush3.bf16.msra.mxu0 %v2256_v47 }
 0x3aa   :  { %2258 = vmatprep.subr.bf16.mxu0 %v2322_v35 }
 0x3ad   :  { %2260 = vmatpush3.bf16.msra.mxu0 %v2259_v50 }
 0x3ae   :  { %2261 = vmatprep.subr.bf16.mxu0 %v2322_v35 }
 0x3b1   :  { %2263 = vmatpush3.bf16.msra.mxu0 %v2262_v53 }
 0x3b2   :  { %2264 = vmatprep.subr.bf16.mxu0 %v2322_v35 }
 0x3b5   :  { %2266 = vmatpush3.bf16.msra.mxu0 %v2265_v56 }
 0x3b6   :  { %2267 = vmatprep.subr.bf16.mxu0 %v2322_v35 }
 0x3b9   :  { %2269 = vmatpush3.bf16.msra.mxu0 %v2268_v59 }
 0x3ba   :  { %2270 = vmatprep.subr.bf16.mxu0 %v2322_v35  ;;  %v1212_v35 = vld [vmem:[%s3100_s13 + $0x8] sm:$0xff] }
 0x3bb   :  { %v2280_v21 = vpack.c.bf16 %v1212_v35, %v1211_v20 }
 0x3bd   :  { %2272 = vmatpush3.bf16.msra.mxu0 %v2271_v62 }
 0x472   :  { %v917_v63 = vpop.f32.mrb[4].mxu0  ;;  %v1003_v0 = vpop.f32.mrb[8].mxu1 }
 0x473   :  { %v1007_v1 = vmax.f32 %v917_v63, %v1003_v0  ;;  %v1896_v2 = vpop.f32.mrb[5].mxu0  ;;  %v1931_v3 = vpop.f32.mrb[9].mxu1 }
 0x475   :  { %1015 = vrot.lane.b32.xlu1 %v1007_v1, %s2324_s28  ;;  %1011 = vrot.lane.b32.xlu0 %v1007_v1, %s2325_s4  ;;  %1009 = vst.msk [vmem:[#allocation6] sm:$0x1] %vm1008_vm3, %v1007_v1 }
 0x479   :  { %1021 = vrot.lane.b32.xlu0 %v1007_v1, %s2326_s25 }
 0x4e7   :  { %v1016_v7 = vpop.permute.xlu1 %1015  ;;  %v1012_v9 = vpop.permute.xlu0 %1011 }
 0x4e8   :  { %1019 = vst.msk [vmem:[#allocation6 - $0x1] sm:$0x2] %vm1018_vm4, %v1016_v7 }
 0x4e9   :  { %1014 = vst.msk [vmem:[#allocation6 + $0x1] sm:$0x1] %vm1008_vm3, %v1012_v9 }
 0x4ea   :  { %1020 = vst.msk [vmem:[#allocation6] sm:$0x2] %vm1018_vm4, %v1007_v1 }
 0x4eb   :  { %1026 = vst.msk [vmem:[#allocation6 - $0x1] sm:$0x4] %vm1024_vm5, %v1016_v7  ;;  %v1022_v10 = vpop.permute.xlu0 %1021 }
 0x4ec   :  { %1025 = vst.msk [vmem:[#allocation6 - $0x2] sm:$0x4] %vm1024_vm5, %v1022_v10 }
 0x4ed   :  { %1029 = vst.msk [vmem:[#allocation6 - $0x2] sm:$0x8] %vm1027_vm6, %v1022_v10  ;;  %1028 = vst.msk [vmem:[#allocation6 - $0x3] sm:$0x8] %vm1027_vm6, %v1012_v9 }
 0x4f4   :  { %v1030_v11 = vld [vmem:[#allocation6] sm:$0x3] }
 0x4f5   :  { %1965 = vmatmul.mubr.f32.vlgmr.msra.gmra.mrb[6].mxu0 %v1030_v11 }
 0x5c8   :  { %v1120_v16 = vpop.f32.mrb[6].mxu0 }
 0x5c9   :  { %v1121_v17 = vadd.f32 %v1379_v15, %v1120_v16  ;;  %v1966_v18 = vpop.f32.mrb[7].mxu0 }
 0x5cb   :  { %v1124_v19 = vmax.f32 %v1121_v17, 0.0 }
 0x5cd   :  { %1976 = vmatmul.mubr.msk.f32.vlgmr.msra.gmra.mrb[10].mxu1 %vm1136_vm7, %v1124_v19 }
 0x5ce   :  { %1982 = vmatprep.mubr.msk.f32.mxu1 %vm2323_vm2, %v2321_v8  ;;  %2281 = vmatpush3.bf16.msra.mxu1 %v2280_v21  ;;  %v1382_v8 = vld [vmem:[%s3101_s14] ss:$0 sm:$0xff] }
 0x6a0   :  { %v1206_v23 = vpop.f32.mrb[10].mxu1 }
 0x6a1   :  { %v1207_v24 = vadd.f32 %v1380_v22, %v1206_v23  ;;  %v1977_v25 = vpop.f32.mrb[11].mxu1 }
 0x6a3   :  { %v1210_v26 = vmax.f32 %v1207_v24, 0.0 }
 0x6a5   :  { %1983 = vmatmul.mubr.msk.f32.vlgmr.msra.gmra.mrb[12].mxu1 %vm1220_vm8, %v1210_v26 }
 0x778   :  { %v1290_v27 = vpop.f32.mrb[12].mxu1 }
 0x779   :  { %v1291_v28 = vadd.f32 %v1382_v8, %v1290_v27  ;;  %v1984_v29 = vpop.f32.mrb[13].mxu1 }
 0x77b   :  { %v1294_v30 = vmax.f32 %v1291_v28, 0.0 }
 0x77d   :  { %1296 = vst.msk [vmem:[#allocation7] sm:$0x3] %vm1295_vm9, %v1294_v30 }
 0x77e   :  { %2306 = shalt.err (!%p2303_p4)
}
 0x77f   :  { %s2307_s14 = scalar_lea.hbm %s3102_s15, 32 }
 0x780   :  { %p2308_p5 = scmp.ne.s32.totalorder %s3102_s15, %s2307_s14  ;;  %p2311_p6 = scmp.lt.u32.totalorder %s2307_s14, %s3102_s15 }
 0x782   :  { %p2313_p7 = pnand %p2311_p6, %p2308_p5 }
 0x784   :  { %2316 = shalt.err (!%p2313_p7)
}
 0x785   :  { %1306 = dma.vmem_to_hbm [thread:$0]  %s1304_s22, 32, %s3102_s15, [#allocation8]  }
 0x786   :  { %2317 = dma.done.wait [#allocation8], 32  }
 0x787   :  { %2318 = vsyncadd [#allocation8], 4294967264 }
 0x788   :  { %1310 = vsyncpa [#allocation8], 1 }

</bundles_post_ra>
